<compile_context>
chip_gen: v6e
topology: v6e:2x2x1
jax: 0.10.0
libtpu: 0.0.40
codegen_flags: <defaults>
</compile_context>

<pallas_src>
import jax
import jax.numpy as jnp
from jax import lax
from jax.experimental import pallas as pl
from jax.experimental.pallas import tpu as pltpu


_MXU_DTYPE = jnp.float32  # flip to jnp.bfloat16 on v6e/v7x for 2x MXU throughput


def _attn_kernel(xf_ref, xq_ref, a_ref, r_ref, wv_ref, bv_ref, gamma_ref, o_ref):
    """Per (batch, query-tile): energy -> softmax -> Wv @ (X @ P^T), gamma * out + x."""
    xf = xf_ref[0]                                                  # (C, N)  keys, resident
    xq = xq_ref[0]                                                  # (C, Tq) queries

    a = a_ref[...].astype(_MXU_DTYPE)                               # (C, C) = Wq^T Wk
    r = r_ref[...]                                                  # (1, C) = Wk^T bq
    xq_m = xq.astype(_MXU_DTYPE)
    xf_m = xf.astype(_MXU_DTYPE)

    # t[iq, c'] = sum_c xq[c, iq] * A[c, c'] + r[c']   (contract over C; no in-kernel .T)
    t = lax.dot_general(xq_m, a, (((0,), (0,)), ((), ())),
                        preferred_element_type=jnp.float32) + r     # (Tq, C)
    # energy[iq, j] = sum_c t[iq, c] * xf[c, j]
    energy = jnp.dot(t.astype(_MXU_DTYPE), xf_m,
                     preferred_element_type=jnp.float32)            # (Tq, N)

    # Exact softmax over the resident key axis; normalisation deferred to the output.
    m = jnp.max(energy, axis=-1, keepdims=True)                     # (Tq, 1)
    p = jnp.exp(energy - m)                                         # (Tq, N)
    p_m = p.astype(_MXU_DTYPE)

    # Row sums as a lane-dense (1, Tq) vector via an MXU contraction over N
    # (avoids a sublane->lane relayout of the reduction result).
    ones = jnp.ones((1, p_m.shape[-1]), dtype=_MXU_DTYPE)
    l = lax.dot_general(ones, p_m, (((1,), (1,)), ((), ())),
                        preferred_element_type=jnp.float32)         # (1, Tq)
    inv_l = pl.reciprocal(l, approx=True)                           # EUP slot, ~free

    # s[c, iq] = sum_j x[c, j] * p[iq, j]   (contract over N; big MXU-friendly matmul)
    s = lax.dot_general(xf_m, p_m, (((1,), (1,)), ((), ())),
                        preferred_element_type=jnp.float32)         # (C, Tq)
    # Value projection folded behind attention: out = Wv @ s / l + bv   (tiny matmul)
    out = jnp.dot(wv_ref[...], s, preferred_element_type=jnp.float32)  # (C, Tq)

    gamma = gamma_ref[0, 0]
    o_ref[0] = (gamma * (out * inv_l + bv_ref[...]) + xq).astype(o_ref.dtype)


def _pick_query_tile(N, C, vmem_budget_bytes=40 * 2**20):
    """Largest Tq (multiple of 128 dividing N, or N itself) whose per-step working set
    fits the budget (sized conservatively for v7x's 64 MiB VMEM)."""
    def est(tq):
        resident = 2 * (C * N + 2 * C * tq + 2 * C * C + 2 * C)  # double-buffered blocks
        work = 2 * tq * N + 6 * C * tq                           # energy/p + temporaries
        return 4 * (resident + work)                             # f32 bytes

    if N % 128 != 0 or est(N) <= vmem_budget_bytes:
        return N
    for t in (4096, 2048, 1024, 512, 256, 128):
        if N % t == 0 and est(t) <= vmem_budget_bytes:
            return t
    return 128 if N % 128 == 0 else N


def global_attention(x_ncdhw, wq, bq, wk, bk, wv, bv, gamma, *, query_tile=None):
    """x_ncdhw: (B, C, D, H, W) float32.  Returns gamma * attention(x) + x."""
    B, C, D, H, W = x_ncdhw.shape
    N = D * H * W

    # Channel-major layout: only reshapes, N stays lane-dense everywhere.
    x_cn = x_ncdhw.reshape(B, C, N).astype(jnp.float32)

    # Fold the query/key 1x1x1 convs (tiny weight prep, O(C^2 * C//8) flops):
    #   energy[i, j] = q_i . k_j = x_i^T (Wq^T Wk) x_j + (Wk^T bq) . x_j + row-const(i)
    # Row-constant terms are dropped: softmax over j is invariant to them.
    wq32, wk32 = wq.astype(jnp.float32), wk.astype(jnp.float32)
    a_mat = wq32.T @ wk32                                        # (C, C)
    r_row = (wk32.T @ bq.astype(jnp.float32)).reshape(1, C)      # (1, C)

    wv32 = wv.astype(jnp.float32)                                # (C, C)  [out, in]
    bv_col = bv.astype(jnp.float32).reshape(C, 1)
    gamma2 = jnp.asarray(gamma, jnp.float32).reshape(1, 1)

    tq = query_tile if query_tile is not None else _pick_query_tile(N, C)
    assert N % tq == 0, (N, tq)
    n_q = N // tq

    vmem_est = 4 * (2 * (C * N + 2 * C * tq + 2 * C * C + 2 * C)
                    + 2 * tq * N + 6 * C * tq)
    attn_cost = pl.CostEstimate(
        flops=2 * B * (2 * N * N * C + N * N + 2 * N * C * C),
        transcendentals=B * N * N,
        bytes_accessed=4 * (3 * B * N * C + 3 * C * C + 3 * C),
    )
    out_cn = pl.pallas_call(
        _attn_kernel,
        out_shape=jax.ShapeDtypeStruct((B, C, N), jnp.float32),
        grid=(B, n_q),
        in_specs=[
            pl.BlockSpec((1, C, N), lambda b, qi: (b, 0, 0)),    # x (keys), resident per batch
            pl.BlockSpec((1, C, tq), lambda b, qi: (b, 0, qi)),  # x (query tile)
            pl.BlockSpec((C, C), lambda b, qi: (0, 0)),          # A = Wq^T Wk
            pl.BlockSpec((1, C), lambda b, qi: (0, 0)),          # r = Wk^T bq
            pl.BlockSpec((C, C), lambda b, qi: (0, 0)),          # Wv
            pl.BlockSpec((C, 1), lambda b, qi: (0, 0)),          # bv
            pl.BlockSpec(memory_space=pltpu.MemorySpace.SMEM),   # gamma scalar
        ],
        out_specs=pl.BlockSpec((1, C, tq), lambda b, qi: (b, 0, qi)),
        compiler_params=pltpu.CompilerParams(
            dimension_semantics=("parallel", "parallel"),
            vmem_limit_bytes=int(min(max(2 * vmem_est, 32 * 2**20), 64 * 2**20))),
        cost_estimate=attn_cost,
    )(x_cn, x_cn, a_mat, r_row, wv32, bv_col, gamma2)

    return out_cn.reshape(B, C, D, H, W)


def _reference(x, wq, bq, wk, bk, wv, bv, gamma):
    """Plain-JAX mirror of the PyTorch forward for verification."""
    B, C, D, H, W = x.shape
    N = D * H * W
    xf = x.reshape(B, C, N)
    q = jnp.einsum('oc,bcn->bon', wq, xf) + bq[None, :, None]   # (B, Cq, N)
    k = jnp.einsum('oc,bcn->bon', wk, xf) + bk[None, :, None]   # (B, Cq, N)
    v = jnp.einsum('oc,bcn->bon', wv, xf) + bv[None, :, None]   # (B, C,  N)
    energy = jnp.einsum('bci,bcj->bij', q, k)                   # (B, N, N)
    attn = jax.nn.softmax(energy, axis=-1)
    out = jnp.einsum('bcj,bij->bci', v, attn)                   # (B, C, N)
    out = out.reshape(B, C, D, H, W)
    return gamma * out + x


if __name__ == "__main__":
    B, C, D, H, W = 2, 16, 4, 8, 8        # N = 256 (lane-dense), C//8 = 2
    Cq = C // 8

    key = jax.random.PRNGKey(0)
    kx, kq, kk, kv, kbq, kbk, kbv = jax.random.split(key, 7)

    x = jax.random.normal(kx, (B, C, D, H, W), dtype=jnp.float32)
    # Conv3d(in, out, kernel_size=1) weights -> (out, in) matrices for 1x1x1 conv.
    wq = 0.1 * jax.random.normal(kq, (Cq, C), dtype=jnp.float32)
    wk = 0.1 * jax.random.normal(kk, (Cq, C), dtype=jnp.float32)
    wv = 0.1 * jax.random.normal(kv, (C, C), dtype=jnp.float32)
    bq = 0.1 * jax.random.normal(kbq, (Cq,), dtype=jnp.float32)
    bk = 0.1 * jax.random.normal(kbk, (Cq,), dtype=jnp.float32)
    bv = 0.1 * jax.random.normal(kbv, (C,), dtype=jnp.float32)
    # Module __init__ sets gamma = 0; use a nonzero deterministic value so the
    # attention path actually contributes to the output being checked.
    gamma = jnp.float32(0.5)

    ref = _reference(x, wq, bq, wk, bk, wv, bv, gamma)

    # Single query tile per batch element (auto-sized) ...
    out = global_attention(x, wq, bq, wk, bk, wv, bv, gamma)
    out = jax.block_until_ready(out)
    assert out.shape == (B, C, D, H, W)
    # Tolerance 2e-3: pl.reciprocal(approx=True) on the softmax denominator.
    assert jnp.allclose(out, ref, rtol=2e-3, atol=2e-3), (
        f"max abs err = {jnp.max(jnp.abs(out - ref))}")

    # ... and the multi-query-tile path (keys resident across tiles).
    out_tiled = global_attention(x, wq, bq, wk, bk, wv, bv, gamma, query_tile=128)
    out_tiled = jax.block_until_ready(out_tiled)
    assert jnp.allclose(out_tiled, ref, rtol=2e-3, atol=2e-3), (
        f"max abs err (tiled) = {jnp.max(jnp.abs(out_tiled - ref))}")

    print("KERNEL_OK")
</pallas_src>

<mosaic_0001>
module attributes {stable_mosaic.version = 11 : i64} {
  func.func @_attn_kernel(%arg0: i32, %arg1: i32, %arg2: memref<1x16x256xf32, #tpu.memory_space<vmem>>, %arg3: memref<1x16x256xf32, #tpu.memory_space<vmem>>, %arg4: memref<16x16xf32, #tpu.memory_space<vmem>>, %arg5: memref<1x16xf32, #tpu.memory_space<vmem>>, %arg6: memref<16x16xf32, #tpu.memory_space<vmem>>, %arg7: memref<16x1xf32, #tpu.memory_space<vmem>>, %arg8: memref<1x1xf32, #tpu.memory_space<smem>>, %arg9: memref<1x16x256xf32, #tpu.memory_space<vmem>>) attributes {dimension_semantics = [#tpu.dimension_semantics<parallel>, #tpu.dimension_semantics<parallel>], iteration_bounds = array<i64: 2, 1>, scalar_prefetch = 0 : i64, scratch_operands = 0 : i64, tpu.core_type = #tpu.core_type<tc>, window_params = [{transform_indices = @transform_0, window_bounds = array<i64: 1, 16, 256>}, {transform_indices = @transform_1, window_bounds = array<i64: 1, 16, 256>}, {pipeline_mode = #tpu.pipeline_mode<synchronous>, transform_indices = @transform_2, window_bounds = array<i64: 16, 16>}, {pipeline_mode = #tpu.pipeline_mode<synchronous>, transform_indices = @transform_3, window_bounds = array<i64: 1, 16>}, {pipeline_mode = #tpu.pipeline_mode<synchronous>, transform_indices = @transform_4, window_bounds = array<i64: 16, 16>}, {pipeline_mode = #tpu.pipeline_mode<synchronous>, transform_indices = @transform_5, window_bounds = array<i64: 16, 1>}, {transform_indices = @transform_6, window_bounds = array<i64: 1, 1>}, {transform_indices = @transform_7, window_bounds = array<i64: 1, 16, 256>}]} {
    %c0 = arith.constant 0 : index
    %c0_0 = arith.constant 0 : index
    %c0_1 = arith.constant 0 : index
    %0 = vector.load %arg2[%c0, %c0_0, %c0_1] : memref<1x16x256xf32, #tpu.memory_space<vmem>>, vector<1x16x256xf32>
    %1 = vector.shape_cast %0 : vector<1x16x256xf32> to vector<16x256xf32>
    %c0_2 = arith.constant 0 : index
    %c0_3 = arith.constant 0 : index
    %c0_4 = arith.constant 0 : index
    %2 = vector.load %arg3[%c0_2, %c0_3, %c0_4] : memref<1x16x256xf32, #tpu.memory_space<vmem>>, vector<1x16x256xf32>
    %3 = vector.shape_cast %2 : vector<1x16x256xf32> to vector<16x256xf32>
    %c0_5 = arith.constant 0 : index
    %c0_6 = arith.constant 0 : index
    %4 = vector.load %arg4[%c0_5, %c0_6] : memref<16x16xf32, #tpu.memory_space<vmem>>, vector<16x16xf32>
    %c0_7 = arith.constant 0 : index
    %c0_8 = arith.constant 0 : index
    %5 = vector.load %arg5[%c0_7, %c0_8] : memref<1x16xf32, #tpu.memory_space<vmem>>, vector<1x16xf32>
    %cst = arith.constant dense<0.000000e+00> : vector<256x16xf32>
    %6 = tpu.matmul %3, %4, %cst {dimension_numbers = #tpu.dot_dimension_numbers<[0], [0], [1], [1], [0, 1, 1, 1], [], []>} : vector<16x256xf32>, vector<16x16xf32>, vector<256x16xf32> -> vector<256x16xf32>
    %7 = vector.broadcast %5 : vector<1x16xf32> to vector<256x16xf32>
    %8 = arith.addf %6, %7 : vector<256x16xf32>
    %cst_9 = arith.constant dense<0.000000e+00> : vector<256x256xf32>
    %9 = tpu.matmul %8, %1, %cst_9 {dimension_numbers = #tpu.dot_dimension_numbers<[1], [0], [0], [1], [0, 0, 1, 1], [], []>} : vector<256x16xf32>, vector<16x256xf32>, vector<256x256xf32> -> vector<256x256xf32>
    %cst_10 = arith.constant dense<0xFF800000> : vector<256xf32>
    %10 = vector.multi_reduction <maximumf>, %9, %cst_10 [1] : vector<256x256xf32> to vector<256xf32>
    %11 = vector.shape_cast %10 : vector<256xf32> to vector<256x1xf32>
    %12 = vector.broadcast %11 : vector<256x1xf32> to vector<256x256xf32>
    %13 = arith.subf %9, %12 : vector<256x256xf32>
    %14 = math.exp %13 : vector<256x256xf32>
    %cst_11 = arith.constant 1.000000e+00 : f32
    %15 = vector.broadcast %cst_11 : f32 to vector<1x256xf32>
    %cst_12 = arith.constant dense<0.000000e+00> : vector<1x256xf32>
    %16 = tpu.matmul %15, %14, %cst_12 {dimension_numbers = #tpu.dot_dimension_numbers<[1], [1], [0], [0], [0, 0, 1, 0], [], []>} : vector<1x256xf32>, vector<256x256xf32>, vector<1x256xf32> -> vector<1x256xf32>
    %17 = tpu.reciprocal %16 {approx = true} : vector<1x256xf32> -> vector<1x256xf32>
    %cst_13 = arith.constant dense<0.000000e+00> : vector<16x256xf32>
    %18 = tpu.matmul %1, %14, %cst_13 {dimension_numbers = #tpu.dot_dimension_numbers<[1], [1], [0], [0], [0, 0, 1, 0], [], []>} : vector<16x256xf32>, vector<256x256xf32>, vector<16x256xf32> -> vector<16x256xf32>
    %c0_14 = arith.constant 0 : index
    %c0_15 = arith.constant 0 : index
    %19 = vector.load %arg6[%c0_14, %c0_15] : memref<16x16xf32, #tpu.memory_space<vmem>>, vector<16x16xf32>
    %cst_16 = arith.constant dense<0.000000e+00> : vector<16x256xf32>
    %20 = tpu.matmul %19, %18, %cst_16 {dimension_numbers = #tpu.dot_dimension_numbers<[1], [0], [0], [1], [0, 0, 1, 1], [], []>} : vector<16x16xf32>, vector<16x256xf32>, vector<16x256xf32> -> vector<16x256xf32>
    %c0_17 = arith.constant 0 : index
    %c0_18 = arith.constant 0 : index
    %21 = memref.load %arg8[%c0_17, %c0_18] : memref<1x1xf32, #tpu.memory_space<smem>>
    %22 = vector.broadcast %17 : vector<1x256xf32> to vector<16x256xf32>
    %23 = arith.mulf %20, %22 : vector<16x256xf32>
    %c0_19 = arith.constant 0 : index
    %c0_20 = arith.constant 0 : index
    %24 = vector.load %arg7[%c0_19, %c0_20] : memref<16x1xf32, #tpu.memory_space<vmem>>, vector<16x1xf32>
    %25 = vector.broadcast %24 : vector<16x1xf32> to vector<16x256xf32>
    %26 = arith.addf %23, %25 : vector<16x256xf32>
    %27 = vector.broadcast %21 : f32 to vector<16x256xf32>
    %28 = arith.mulf %27, %26 : vector<16x256xf32>
    %29 = arith.addf %28, %3 : vector<16x256xf32>
    %c0_21 = arith.constant 0 : index
    %c0_22 = arith.constant 0 : index
    %c0_23 = arith.constant 0 : index
    %30 = vector.load %arg9[%c0_21, %c0_22, %c0_23] : memref<1x16x256xf32, #tpu.memory_space<vmem>>, vector<1x16x256xf32>
    %31 = vector.shape_cast %30 : vector<1x16x256xf32> to vector<16x256xf32>
    %32 = vector.shape_cast %29 : vector<16x256xf32> to vector<1x16x256xf32>
    tpu.vector_store %arg9[%c0_21, %c0_22, %c0_23], %32 {strides = array<i32>} : memref<1x16x256xf32, #tpu.memory_space<vmem>>, vector<1x16x256xf32>,
    return
  }
  func.func @transform_0(%arg0: i32, %arg1: i32) -> (i32, i32, i32) {
    %c0_i32 = arith.constant 0 : i32
    %c0_i32_0 = arith.constant 0 : i32
    %c0_i32_1 = arith.constant 0 : i32
    return %arg0, %c0_i32, %c0_i32_0 : i32, i32, i32
  }
  func.func @transform_1(%arg0: i32, %arg1: i32) -> (i32, i32, i32) {
    %c0_i32 = arith.constant 0 : i32
    %c0_i32_0 = arith.constant 0 : i32
    return %arg0, %c0_i32, %arg1 : i32, i32, i32
  }
  func.func @transform_2(%arg0: i32, %arg1: i32) -> (i32, i32) {
    %c0_i32 = arith.constant 0 : i32
    %c0_i32_0 = arith.constant 0 : i32
    %c0_i32_1 = arith.constant 0 : i32
    return %c0_i32, %c0_i32_0 : i32, i32
  }
  func.func @transform_3(%arg0: i32, %arg1: i32) -> (i32, i32) {
    %c0_i32 = arith.constant 0 : i32
    %c0_i32_0 = arith.constant 0 : i32
    %c0_i32_1 = arith.constant 0 : i32
    return %c0_i32, %c0_i32_0 : i32, i32
  }
  func.func @transform_4(%arg0: i32, %arg1: i32) -> (i32, i32) {
    %c0_i32 = arith.constant 0 : i32
    %c0_i32_0 = arith.constant 0 : i32
    %c0_i32_1 = arith.constant 0 : i32
    return %c0_i32, %c0_i32_0 : i32, i32
  }
  func.func @transform_5(%arg0: i32, %arg1: i32) -> (i32, i32) {
    %c0_i32 = arith.constant 0 : i32
    %c0_i32_0 = arith.constant 0 : i32
    %c0_i32_1 = arith.constant 0 : i32
    return %c0_i32, %c0_i32_0 : i32, i32
  }
  func.func @transform_6(%arg0: i32, %arg1: i32) -> (i32, i32) {
    %c0_i32 = arith.constant 0 : i32
    %c0_i32_0 = arith.constant 0 : i32
    %c0_i32_1 = arith.constant 0 : i32
    return %c0_i32, %c0_i32_0 : i32, i32
  }
  func.func @transform_7(%arg0: i32, %arg1: i32) -> (i32, i32, i32) {
    %c0_i32 = arith.constant 0 : i32
    %c0_i32_0 = arith.constant 0 : i32
    return %arg0, %c0_i32, %arg1 : i32, i32, i32
  }
}

</mosaic_0001>

<bundles_post_ra>
// kernel: tpu_custom_call.1
= control target key start
LH: loop header
LB: loop body
LE: loop exit
PB: predicated region body
PF: predicated region fallthrough
CT: control target
= control target key end

     0   :  { %s3094_s0 = inlined_call_operand.hbm [shape: f32[2,16,256], index: 0, kind: input, shape index: {}]   ;;  %s3095_s1 = inlined_call_operand.hbm [shape: f32[2,16,256], index: 1, kind: input, shape index: {}]   ;;  %s3096_s2 = inlined_call_operand.vmem [shape: f32[16,16], index: 2, kind: input, shape index: {}]   ;;  %s3097_s3 = inlined_call_operand.vmem [shape: f32[1,16], index: 3, kind: input, shape index: {}]   ;;  %s3098_s4 = inlined_call_operand.hbm [shape: f32[16,16], index: 4, kind: input, shape index: {}]   ;;  %s3099_s5 = inlined_call_operand.vmem [shape: f32[16,1], index: 5, kind: input, shape index: {}]   ;;  %s3100_s6 = inlined_call_operand.<no memory space> [shape: f32[1,1], index: 6, kind: input, shape index: {}]   ;;  %s3101_s7 = inlined_call_operand.hbm [shape: f32[2,16,256], index: 7, kind: output, shape index: {}]  }
   0x1   :  { %3124 = sst [smem:[#allocation35_spill]] %s3094_s0 }
   0x2   :  { %3125 = sst [smem:[#allocation36_spill]] %s3098_s4 }
   0x3   :  { %12 = sst [smem:[#allocation2]] %s3100_s6 }
   0x4   :  { %13 = vsyncpa [#allocation4], 0 }
   0x5   :  { %15 = vsyncpa [#allocation4 + $0x1], 0 }
   0x6   :  { %16 = vsyncpa [#allocation7], 0 }
   0x7   :  { %18 = vsyncpa [#allocation7 + $0x1], 0 }
   0x8   :  { %19 = vsyncpa [#allocation5], 0 }
   0x9   :  { %21 = vsyncpa [#allocation5 + $0x1], 0  ;;  %s2461_s26 = smov 0   ;;  %s2463_s27 = smov 0  }
   0xa   :  { %s2465_s28 = smov 0   ;;  %s2467_s29 = smov 0  }
   0xb   :  { %s2469_s30 = smov 0   ;;  %s2471_s8 = smov 0  }
   0xc LB: > { %3126 = sst [smem:[#allocation14_spill]] %s2383_s26  ;;  %s2492_s6 = sadd.s32 4294967295, %s2403_s8   ;;  %s2403_s8 = sphi %s2471_s8, %s27_s8   ;;  %s2399_s30 = sphi %s2469_s30, %s3179_s30   ;;  %s2395_s29 = sphi %s2467_s29, %s3178_s29   ;;  %s2391_s28 = sphi %s2465_s28, %s3177_s28   ;;  %s2387_s27 = sphi %s2463_s27, %s3181_s27   ;;  %s2383_s26 = sphi %s2461_s26, %s3180_s26  }
   0xd   : > { %3127 = sst [smem:[#allocation15_spill]] %s2391_s28  ;;  %s1829_s9 = sadd.s32 4294967294, %s2403_s8  }
   0xe   : > { %3128 = sst [smem:[#allocation16_spill]] %s2399_s30  ;;  %p59_p0 = scmp.ne.s32.totalorder %s2387_s27, %s2383_s26 }
   0xf   : > { %p60_p1 = scmp.eq.s32.totalorder %s2492_s6, 0  ;;  %p224_p3 = scmp.eq.s32.totalorder %s1829_s9, 1 }
  0x10   : > { %p1830_p5 = scmp.ge.s32.totalorder %s2403_s8, 1  ;;  %p231_p7 = scmp.lt.s32.totalorder %s2403_s8, 3 }
  0x11   : > { %p2501_p4 = por %p60_p1, %p59_p0  ;;  %p2506_p6 = por %p224_p3, %p59_p0 }
  0x12   : > { %p2511_p8 = pnand %p1830_p5, %p231_p7  ;;  %s2405_s13 = smov [#allocation8]  }
  0x13   : > { %s3130_s11 = scalar_select %p2506_p6, 1, 0 }
  0x14   : > { %s249_s14 = sshll.u32 %s2405_s13, 4  ;;  %p2015_p9 = pneg %p2511_p8  ;;  %s250_s14 = int_to_ptr.vmem [resolvable:$true] %s249_s14 }
  0x15   : > { %3131 = sst [smem:[#allocation17_spill]] %s3130_s11  ;;  %p1832_p10 = scmp.ge.s32.totalorder %s2403_s8, 2 }
  0x16   : > { %p2520_p11 = pnand %p2015_p9, %p60_p1  ;;  %s39_s16 = sadd.s32 1, %s2399_s30 }
  0x17   : > { %s2244_s17 = scalar_lea.vmem %s250_s14, 256  ;;  %p2252_p5 = scmp.lt.s32.totalorder %s250_s14, %s250_s14 }
  0x18   : > { %p2235_p12 = pneg %p2520_p11  ;;  %p2245_p13 = scmp.ne.s32.totalorder %s250_s14, %s2244_s17 }
  0x19   : > { %p2253_p7 = scmp.lt.s32.totalorder %s2244_s17, %s2244_s17 }
  0x1a   : > { %p2247_p0 = pnand %p2245_p13, %p2235_p12 }
  0x1b   : > { %p2254_p2 = por %p2253_p7, %p2252_p5 }
  0x1c   : > { %p2248_p3 = pneg %p2247_p0 }
  0x1e   : > { %p2255_p6 = pnand %p2254_p2, %p2248_p3 }
  0x20   : > { %2258 = shalt.err (!%p2255_p6)
}
  0x21   : > { %s2406_s18 = smov 128   ;;  %s2407_s19 = smov 8  }
  0x22   : > { %s3134_s4 = sld [smem:[#allocation36_spill]]  ;;  %p41_p2 = scmp.ge.s32.totalorder %s39_s16, 2 }
  0x23   : > { %s46_s22 = sadd.s32 1, %s2391_s28  ;;  %p53_p6 = scmp.ne.s32.totalorder %s2391_s28, %s2387_s27 }
  0x24   : > { %p54_p9 = scmp.eq.s32.totalorder %s2403_s8, 0  ;;  %s3183_s16 = smov (%p41_p2, %s39_s16), 0 }
  0x25   : > { %3135 = sst [smem:[#allocation18_spill]] %s3183_s16  ;;  %p3137_p13 = scmp.eq.s32.totalorder %s2492_s6, 1 }
  0x26   : > { %p2538_p12 = por %p54_p9, %p53_p6  ;;  %s43_s25 = ssub.s32 %s2399_s30, %s3183_s16 }
  0x27   : > { %p2544_p0 = por %p3137_p13, %p53_p6  ;;  %p2031_p3 = scmp.lt.s32.totalorder %s2403_s8, 2 }
  0x28   : > { %2018 = dma.hbm_to_vmem [thread:$0]  (!%p2520_p11), %s3134_s4, 256, %s250_s14, [#allocation7], %s2406_s18, %s2406_s18, %s2407_s19  }
  0x29   : > { %p44_p11 = scmp.eq.s32.totalorder %s43_s25, 0  ;;  %s269_s9 = sand.u32 1, %s2391_s28  }
  0x2a   : > { %s2552_s13 = sshll.u32 %s269_s9, 5  ;;  %s1916_s15 = sshll.u32 %s2399_s30, 9 }
  0x2b   : > { %s2555_s14 = scalar_select %p44_p11, %s2391_s28, %s46_s22  }
  0x2c   : > { %s3140_s0 = sld [smem:[#allocation35_spill]]  ;;  %s273_s20 = scalar_lea.vmem [#allocation3], %s2552_s13 }
  0x2d   : > { %3139 = sst [smem:[#allocation19_spill]] %s2555_s14  ;;  %s280_s21 = sshll.u32 %s273_s20, 4  ;;  %s281_s21 = int_to_ptr.vmem [resolvable:$true] %s280_s21 }
  0x2e   : > { %p2564_p5 = pnand %p2031_p3, %p2538_p12  ;;  %s270_s25 = scalar_lea.sflag [#allocation4], %s269_s9 }
  0x2f   : > { %s2272_s22 = scalar_lea.vmem %s281_s21, 512  ;;  %s2408_s17 = smov [#allocation3]  }
  0x30   : > { %p2261_p7 = pneg %p2564_p5  ;;  %p2273_p2 = scmp.ne.s32.totalorder %s281_s21, %s2272_s22 }
  0x31   : > { %s2277_s18 = sshll.u32 %s2408_s17, 4  ;;  %s2278_s18 = int_to_ptr.vmem [resolvable:$false] %s2277_s18 }
  0x32   : > { %s279_s19 = scalar_lea.hbm %s3140_s0, %s1916_s15  ;;  %p2275_p6 = pnand %p2273_p2, %p2261_p7 }
  0x33   : > { %s2279_s20 = scalar_lea.vmem %s2278_s18, 1024  ;;  %p2280_p13 = scmp.lt.s32.totalorder %s281_s21, %s2278_s18 }
  0x34   : > { %p2276_p9 = pneg %p2275_p6  ;;  %p2281_p12 = scmp.lt.s32.totalorder %s2279_s20, %s2272_s22 }
  0x36   : > { %p2282_p3 = por %p2281_p12, %p2280_p13 }
  0x38   : > { %p2283_p11 = pnand %p2282_p3, %p2276_p9 }
  0x3a   : > { %2286 = shalt.err (!%p2283_p11)
}
  0x3b   : > { %s2409_s23 = smov 256   ;;  %s2410_s9 = smov 16  }
  0x3c   : > { %2022 = dma.hbm_to_vmem [thread:$0]  (!%p2564_p5), %s279_s19, 512, %s281_s21, %s270_s25, %s2409_s23, %s2409_s23, %s2410_s9  }
  0x3d   : > { %s302_s30 = scalar_lea.hbm %s3095_s1, %s1916_s15  ;;  %s294_s17 = scalar_lea.vmem [#allocation6], %s2552_s13 }
  0x3e   : > { %s303_s14 = sshll.u32 %s294_s17, 4  ;;  %s290_s18 = sand.u32 1, %s2403_s8   ;;  %s304_s14 = int_to_ptr.vmem [resolvable:$true] %s303_s14 }
  0x3f   : > { %s291_s22 = scalar_lea.sflag [#allocation7], %s290_s18  ;;  %s2300_s20 = scalar_lea.vmem %s304_s14, 512 }
  0x40   : > { %p2301_p2 = scmp.ne.s32.totalorder %s304_s14, %s2300_s20  ;;  %s2411_s28 = smov [#allocation6]  }
  0x41   : > { %s2305_s11 = sshll.u32 %s2411_s28, 4  ;;  %s2306_s11 = int_to_ptr.vmem [resolvable:$false] %s2305_s11 }
  0x42   : > { %p2303_p6 = pnand %p2301_p2, %p2261_p7  ;;  %s2307_s26 = scalar_lea.vmem %s2306_s11, 1024 }
  0x43   : > { %p2308_p13 = scmp.lt.s32.totalorder %s304_s14, %s2306_s11  ;;  %p2309_p12 = scmp.lt.s32.totalorder %s2307_s26, %s2300_s20 }
  0x44   : > { %p2304_p9 = pneg %p2303_p6 }
  0x45   : > { %p2310_p3 = por %p2309_p12, %p2308_p13 }
  0x47   : > { %p2311_p11 = pnand %p2310_p3, %p2304_p9 }
  0x49   : > { %2314 = shalt.err (!%p2311_p11)
}
  0x4a   : > { %2025 = dma.hbm_to_vmem [thread:$0]  (!%p2564_p5), %s302_s30, 512, %s304_s14, %s291_s22, %s2409_s23, %s2409_s23, %s2410_s9  }
  0x4b   : > { %315 = sbr.rel (%p2511_p8) target bundleno = 1382 (0x566), region = 48 }
  0x50   : > { %s2588_s0 = sand.u32 1, %s2387_s27  }
  0x51   : > { %s2591_s28 = sshll.u32 %s2588_s0, 5  ;;  %s318_s11 = scalar_lea.sflag [#allocation4], %s2588_s0 }
  0x52   : > { %s2595_s26 = scalar_lea.vmem [#allocation3], %s2591_s28 }
  0x53   : > { %2366 = dma.done.wait (%p2501_p4), %s318_s11, 512  }
  0x54   : > { %2368 = vsyncadd (%p2501_p4), %s318_s11, 4294966784  ;;  %s326_s4 = sand.u32 1, %s2492_s6   ;;  %s2603_s12 = scalar_lea.vmem [#allocation6], %s2591_s28 }
  0x55   : > { %s327_s30 = scalar_lea.sflag [#allocation7], %s326_s4 }
  0x56   : > { %2370 = dma.done.wait (%p2501_p4), %s327_s30, 512  }
  0x57   : > { %2372 = vsyncadd (%p2501_p4), %s327_s30, 4294966784 }
  0x58   : > { %2374 = dma.done.wait (%p60_p1), [#allocation7], 256  }
  0x59   : > { %2376 = vsyncadd (%p60_p1), [#allocation7], 4294967040  ;;  %v376_v0 = vld [vmem:[%s2603_s12] sm:$0xff]  ;;  %v377_v1 = vld [vmem:[%s2603_s12 + $0x8] sm:$0xff]  ;;  %vm453_vm0 = vcmask 130048   ;;  %v3107_v39 = vmov 0.0  }
  0x5a   : > { %389 = vxpose.xlu0.b32.start [1/2] (short) %v376_v0, 128  ;;  %421 = vxpose.xlu1.b32.start [1/2] (short) %v377_v1, 128  ;;  %v381_v2 = vld [vmem:[%s3096_s2 + $0x8] sm:$0xff]  ;;  %v380_v3 = vld [vmem:[%s3096_s2] sm:$0xff]  ;;  %v378_v4 = vld [vmem:[%s2603_s12 + $0x10] sm:$0xff]  ;;  %s1651_s9 = sld [smem:[#allocation2]]  ;;  %s369_s17 = scalar_lea.vmem [#allocation9], %s2591_s28 }
  0x5b   : > { %v379_v5 = vld [vmem:[%s2603_s12 + $0x18] sm:$0xff]  ;;  %1953 = vmatprep.subr.mxu0 %v381_v2  ;;  %v374_v35 = vld [vmem:[%s2595_s26 + $0x10] sm:$0xff]  ;;  %v2647_v36 = vld [vmem:[%s2595_s26 + $0x8] sm:$0xff]  ;;  %935 = vmatprep.mubr.f32.mxu1 %v3107_v39  ;;  %s1709_s18 = sshll.u32 %s369_s17, 4  ;;  %s1918_s22 = sshll.u32 %s2395_s29, 9  ;;  %s3039_s18 = int_to_ptr.vmem [resolvable:$true] %s1709_s18 }
  0x5c   : > { %1954 = vmatpush3.msra.mxu0 %v381_v2  ;;  %v375_v34 = vld [vmem:[%s2595_s26 + $0x18] sm:$0xff]  ;;  %v372_v38 = vld [vmem:[%s2595_s26] sm:$0xff]  ;;  %s3045_s11 = scalar_lea.hbm %s3101_s7, %s1918_s22  ;;  %s2315_s29 = scalar_lea.vmem %s3039_s18, 512 }
  0x5d   : > { %1955 = vmatprep.subr.mxu0 %v380_v3  ;;  %899 = vmatprep.subr.mxu1 %v375_v34  ;;  %v2666_v44 = vld [vmem:[%s3097_s3] ss:$0 sm:$0xff]  ;;  %p2316_p1 = scmp.ne.s32.totalorder %s3039_s18, %s2315_s29  ;;  %s2415_s4 = smov [#allocation9]  }
  0x5e   : > { %390 = vxpose.xlu0.b32.end [2/2] (short) %v378_v4, 128  ;;  %422 = vxpose.xlu1.b32.end [2/2] (short) %v379_v5, 128  ;;  %s2319_s30 = sshll.u32 %s2415_s4, 4  ;;  %s2320_s30 = int_to_ptr.vmem [resolvable:$false] %s2319_s30 }
  0x5f   : > { %1956 = vmatpush3.msra.mxu0 %v380_v3  ;;  %900 = vmatpush1.msra.mxu1 %v374_v35  ;;  %p2317_p4 = pnand %p2316_p1, %p2544_p0  ;;  %s2321_s16 = scalar_lea.vmem %s2320_s30, 1024 }
  0x60   : > { %901 = vmatprep.subr.mxu1 %v2647_v36  ;;  %p2322_p5 = scmp.lt.s32.totalorder %s3039_s18, %s2320_s30  ;;  %p2323_p7 = scmp.lt.s32.totalorder %s2321_s16, %s2315_s29 }
  0x61   : > { %902 = vmatpush1.msra.mxu1 %v372_v38  ;;  %p2318_p8 = pneg %p2317_p4 }
  0x62   : > { %p2324_p2 = por %p2323_p7, %p2322_p5 }
  0x64   : > { %p2325_p6 = pnand %p2324_p2, %p2318_p8 }
  0xd6   : > { %v405_v6 = vpop.trf.xlu0  ;;  %v437_v7 = vpop.trf.xlu1 }
  0xd7   : > { %1957 = vmatprep.mubr.msk.f32.mxu0 %vm453_vm0, %v405_v6 }
  0xda   : > { %v406_v8 = vpop.trf.xlu0  ;;  %v438_v9 = vpop.trf.xlu1 }
  0xdb   : > { %1958 = vmatmul.mubr.msk.f32.vlgmr.msra.gmra.mxu0 %vm453_vm0, %v406_v8 }
  0xde   : > { %v407_v10 = vpop.trf.xlu0  ;;  %v439_v12 = vpop.trf.xlu1 }
  0xdf   : > { %1960 = vmatprep.mubr.msk.f32.mxu0 %vm453_vm0, %v407_v10 }
  0xe2   : > { %v408_v11 = vpop.trf.xlu0  ;;  %v440_v14 = vpop.trf.xlu1 }
  0xe3   : > { %1961 = vmatmul.mubr.msk.f32.gmra.mxu0 %vm453_vm0, %v408_v11 }
  0xe6   : > { %v409_v13 = vpop.trf.xlu0  ;;  %v441_v17 = vpop.trf.xlu1 }
  0xe7   : > { %1963 = vmatprep.mubr.msk.f32.mxu0 %vm453_vm0, %v409_v13 }
  0xea   : > { %v410_v15 = vpop.trf.xlu0  ;;  %v442_v19 = vpop.trf.xlu1 }
  0xeb   : > { %1964 = vmatmul.mubr.msk.f32.gmra.mxu0 %vm453_vm0, %v410_v15 }
  0xee   : > { %v411_v16 = vpop.trf.xlu0  ;;  %v443_v22 = vpop.trf.xlu1 }
  0xef   : > { %1966 = vmatprep.mubr.msk.f32.mxu0 %vm453_vm0, %v411_v16 }
  0xf2   : > { %v412_v18 = vpop.trf.xlu0  ;;  %v444_v24 = vpop.trf.xlu1 }
  0xf3   : > { %1967 = vmatmul.mubr.msk.f32.gmra.mxu0 %vm453_vm0, %v412_v18 }
  0xf6   : > { %v413_v20 = vpop.trf.xlu0  ;;  %v445_v27 = vpop.trf.xlu1 }
  0xf7   : > { %1969 = vmatprep.mubr.msk.f32.mxu0 %vm453_vm0, %v413_v20 }
  0xfa   : > { %v414_v21 = vpop.trf.xlu0  ;;  %v446_v29 = vpop.trf.xlu1 }
  0xfb   : > { %1970 = vmatmul.mubr.msk.f32.gmra.mxu0 %vm453_vm0, %v414_v21 }
  0xfe   : > { %v415_v23 = vpop.trf.xlu0  ;;  %v447_v32 = vpop.trf.xlu1 }
  0xff   : > { %1972 = vmatprep.mubr.msk.f32.mxu0 %vm453_vm0, %v415_v23 }
 0x102   : > { %v416_v25 = vpop.trf.xlu0  ;;  %v448_v33 = vpop.trf.xlu1 }
 0x103   : > { %1973 = vmatmul.mubr.msk.f32.gmra.mxu0 %vm453_vm0, %v416_v25 }
 0x106   : > { %v417_v26 = vpop.trf.xlu0  ;;  %v449_v37 = vpop.trf.xlu1 }
 0x107   : > { %1975 = vmatprep.mubr.msk.f32.mxu0 %vm453_vm0, %v417_v26 }
 0x10a   : > { %v418_v28 = vpop.trf.xlu0  ;;  %v450_v40 = vpop.trf.xlu1 }
 0x10b   : > { %1976 = vmatmul.mubr.msk.f32.gmra.mxu0 %vm453_vm0, %v418_v28 }
 0x10e   : > { %v419_v30 = vpop.trf.xlu0  ;;  %v451_v41 = vpop.trf.xlu1 }
 0x10f   : > { %1978 = vmatprep.mubr.msk.f32.mxu0 %vm453_vm0, %v419_v30 }
 0x112   : > { %v420_v31 = vpop.trf.xlu0  ;;  %v452_v42 = vpop.trf.xlu1 }
 0x113   : > { %1979 = vmatmul.mubr.msk.f32.gmra.mxu0 %vm453_vm0, %v420_v31 }
 0x114   : > { %1981 = vmatprep.mubr.msk.f32.mxu0 %vm453_vm0, %v437_v7 }
 0x117   : > { %1982 = vmatmul.mubr.msk.f32.gmra.mxu0 %vm453_vm0, %v438_v9 }
 0x118   : > { %1984 = vmatprep.mubr.msk.f32.mxu0 %vm453_vm0, %v439_v12 }
 0x11b   : > { %1985 = vmatmul.mubr.msk.f32.gmra.mxu0 %vm453_vm0, %v440_v14 }
 0x11c   : > { %1987 = vmatprep.mubr.msk.f32.mxu0 %vm453_vm0, %v441_v17 }
 0x11f   : > { %1988 = vmatmul.mubr.msk.f32.gmra.mxu0 %vm453_vm0, %v442_v19 }
 0x120   : > { %1990 = vmatprep.mubr.msk.f32.mxu0 %vm453_vm0, %v443_v22 }
 0x123   : > { %1991 = vmatmul.mubr.msk.f32.gmra.mxu0 %vm453_vm0, %v444_v24 }
 0x124   : > { %1993 = vmatprep.mubr.msk.f32.mxu0 %vm453_vm0, %v445_v27 }
 0x127   : > { %1994 = vmatmul.mubr.msk.f32.gmra.mxu0 %vm453_vm0, %v446_v29 }
 0x128   : > { %1996 = vmatprep.mubr.msk.f32.mxu0 %vm453_vm0, %v447_v32 }
 0x12b   : > { %1997 = vmatmul.mubr.msk.f32.gmra.mxu0 %vm453_vm0, %v448_v33 }
 0x12c   : > { %1999 = vmatprep.mubr.msk.f32.mxu0 %vm453_vm0, %v449_v37 }
 0x12f   : > { %2000 = vmatmul.mubr.msk.f32.gmra.mxu0 %vm453_vm0, %v450_v40 }
 0x130   : > { %2002 = vmatprep.mubr.msk.f32.mxu0 %vm453_vm0, %v451_v41 }
 0x133   : > { %2003 = vmatmul.mubr.msk.f32.gmra.mxu0 %vm453_vm0, %v452_v42 }
 0x19b   : > { %v1959_v43 = vpop.f32.mrf.mxu0 }
 0x19c   : > { %v622_v47 = vadd.f32 %v1959_v43, %v2666_v44 }
 0x19d   : > { %v616_v45 = vpop.f32.mrf.mxu0 }
 0x19e   : > { %v617_v46 = vadd.f32 %v2666_v44, %v616_v45 }
 0x1a0   : > { %1877 = vmatmul.mubr.msk.f32.vlgmr.msra.gmra.mxu1 %vm453_vm0, %v617_v46 }
 0x1a1   : > { %941 = vmatprep.mubr.f32.mxu1 %v3107_v39 }
 0x1a3   : > { %v1962_v48 = vpop.f32.mrf.mxu0 }
 0x1a4   : > { %1878 = vmatmul.mubr.msk.f32.gmra.mxu1 %vm453_vm0, %v622_v47  ;;  %v632_v51 = vadd.f32 %v1962_v48, %v2666_v44 }
 0x1a5   : > { %v626_v49 = vpop.f32.mrf.mxu0  ;;  %947 = vmatprep.mubr.f32.mxu1 %v3107_v39 }
 0x1a6   : > { %v627_v50 = vadd.f32 %v2666_v44, %v626_v49 }
 0x1a8   : > { %1879 = vmatmul.mubr.msk.f32.gmra.mxu1 %vm453_vm0, %v627_v50 }
 0x1a9   : > { %953 = vmatprep.mubr.f32.mxu1 %v3107_v39 }
 0x1ab   : > { %v1965_v52 = vpop.f32.mrf.mxu0 }
 0x1ac   : > { %1880 = vmatmul.mubr.msk.f32.gmra.mxu1 %vm453_vm0, %v632_v51  ;;  %v642_v55 = vadd.f32 %v1965_v52, %v2666_v44 }
 0x1ad   : > { %v636_v53 = vpop.f32.mrf.mxu0  ;;  %959 = vmatprep.mubr.f32.mxu1 %v3107_v39 }
 0x1ae   : > { %v637_v54 = vadd.f32 %v2666_v44, %v636_v53 }
 0x1b0   : > { %1881 = vmatmul.mubr.msk.f32.gmra.mxu1 %vm453_vm0, %v637_v54 }
 0x1b1   : > { %965 = vmatprep.mubr.f32.mxu1 %v3107_v39 }
 0x1b3   : > { %v1968_v56 = vpop.f32.mrf.mxu0 }
 0x1b4   : > { %1882 = vmatmul.mubr.msk.f32.gmra.mxu1 %vm453_vm0, %v642_v55  ;;  %v652_v59 = vadd.f32 %v1968_v56, %v2666_v44 }
 0x1b5   : > { %v646_v57 = vpop.f32.mrf.mxu0  ;;  %971 = vmatprep.mubr.f32.mxu1 %v3107_v39 }
 0x1b6   : > { %v647_v58 = vadd.f32 %v2666_v44, %v646_v57 }
 0x1b8   : > { %1883 = vmatmul.mubr.msk.f32.gmra.mxu1 %vm453_vm0, %v647_v58 }
 0x1b9   : > { %977 = vmatprep.mubr.f32.mxu1 %v3107_v39 }
 0x1bb   : > { %v1971_v60 = vpop.f32.mrf.mxu0 }
 0x1bc   : > { %1884 = vmatmul.mubr.msk.f32.gmra.mxu1 %vm453_vm0, %v652_v59  ;;  %v662_v63 = vadd.f32 %v1971_v60, %v2666_v44 }
 0x1bd   : > { %v656_v61 = vpop.f32.mrf.mxu0  ;;  %983 = vmatprep.mubr.f32.mxu1 %v3107_v39 }
 0x1be   : > { %v657_v62 = vadd.f32 %v2666_v44, %v656_v61 }
 0x1c0   : > { %1885 = vmatmul.mubr.msk.f32.gmra.mxu1 %vm453_vm0, %v657_v62 }
 0x1c1   : > { %989 = vmatprep.mubr.f32.mxu1 %v3107_v39 }
 0x1c3   : > { %v1974_v0 = vpop.f32.mrf.mxu0 }
 0x1c4   : > { %1886 = vmatmul.mubr.msk.f32.gmra.mxu1 %vm453_vm0, %v662_v63  ;;  %v672_v3 = vadd.f32 %v1974_v0, %v2666_v44 }
 0x1c5   : > { %v666_v1 = vpop.f32.mrf.mxu0  ;;  %995 = vmatprep.mubr.f32.mxu1 %v3107_v39 }
 0x1c6   : > { %v667_v2 = vadd.f32 %v2666_v44, %v666_v1 }
 0x1c8   : > { %1887 = vmatmul.mubr.msk.f32.gmra.mxu1 %vm453_vm0, %v667_v2 }
 0x1c9   : > { %1001 = vmatprep.mubr.f32.mxu1 %v3107_v39 }
 0x1cb   : > { %v1977_v4 = vpop.f32.mrf.mxu0 }
 0x1cc   : > { %1888 = vmatmul.mubr.msk.f32.gmra.mxu1 %vm453_vm0, %v672_v3  ;;  %v682_v7 = vadd.f32 %v1977_v4, %v2666_v44 }
 0x1cd   : > { %v676_v5 = vpop.f32.mrf.mxu0  ;;  %1007 = vmatprep.mubr.f32.mxu1 %v3107_v39 }
 0x1ce   : > { %v677_v6 = vadd.f32 %v2666_v44, %v676_v5 }
 0x1d0   : > { %1889 = vmatmul.mubr.msk.f32.gmra.mxu1 %vm453_vm0, %v677_v6 }
 0x1d1   : > { %1013 = vmatprep.mubr.f32.mxu1 %v3107_v39 }
 0x1d3   : > { %v1980_v8 = vpop.f32.mrf.mxu0 }
 0x1d4   : > { %1890 = vmatmul.mubr.msk.f32.gmra.mxu1 %vm453_vm0, %v682_v7  ;;  %v692_v12 = vadd.f32 %v1980_v8, %v2666_v44 }
 0x1d5   : > { %v686_v9 = vpop.f32.mrf.mxu0  ;;  %1019 = vmatprep.mubr.f32.mxu1 %v3107_v39 }
 0x1d6   : > { %v687_v10 = vadd.f32 %v2666_v44, %v686_v9 }
 0x1d7   : > { %v1983_v11 = vpop.f32.mrf.mxu0 }
 0x1d8   : > { %1891 = vmatmul.mubr.msk.f32.gmra.mxu1 %vm453_vm0, %v687_v10  ;;  %v702_v16 = vadd.f32 %v1983_v11, %v2666_v44 }
 0x1d9   : > { %1025 = vmatprep.mubr.f32.mxu1 %v3107_v39  ;;  %v696_v13 = vpop.f32.mrf.mxu0 }
 0x1da   : > { %v697_v14 = vadd.f32 %v2666_v44, %v696_v13 }
 0x1db   : > { %v1986_v15 = vpop.f32.mrf.mxu0 }
 0x1dc   : > { %1892 = vmatmul.mubr.msk.f32.gmra.mxu1 %vm453_vm0, %v692_v12  ;;  %v712_v20 = vadd.f32 %v1986_v15, %v2666_v44 }
 0x1dd   : > { %1031 = vmatprep.mubr.f32.mxu1 %v3107_v39  ;;  %v706_v17 = vpop.f32.mrf.mxu0 }
 0x1de   : > { %v707_v18 = vadd.f32 %v2666_v44, %v706_v17 }
 0x1df   : > { %v1989_v19 = vpop.f32.mrf.mxu0 }
 0x1e0   : > { %1893 = vmatmul.mubr.msk.f32.gmra.mxu1 %vm453_vm0, %v697_v14  ;;  %v722_v24 = vadd.f32 %v1989_v19, %v2666_v44 }
 0x1e1   : > { %1037 = vmatprep.mubr.f32.mxu1 %v3107_v39  ;;  %v716_v21 = vpop.f32.mrf.mxu0 }
 0x1e2   : > { %v717_v22 = vadd.f32 %v2666_v44, %v716_v21 }
 0x1e3   : > { %v1992_v23 = vpop.f32.mrf.mxu0 }
 0x1e4   : > { %1894 = vmatmul.mubr.msk.f32.gmra.mxu1 %vm453_vm0, %v702_v16  ;;  %v732_v28 = vadd.f32 %v1992_v23, %v2666_v44 }
 0x1e5   : > { %1043 = vmatprep.mubr.f32.mxu1 %v3107_v39  ;;  %v726_v25 = vpop.f32.mrf.mxu0 }
 0x1e6   : > { %v727_v26 = vadd.f32 %v2666_v44, %v726_v25 }
 0x1e7   : > { %v1995_v27 = vpop.f32.mrf.mxu0 }
 0x1e8   : > { %1895 = vmatmul.mubr.msk.f32.gmra.mxu1 %vm453_vm0, %v707_v18  ;;  %v742_v32 = vadd.f32 %v1995_v27, %v2666_v44 }
 0x1e9   : > { %1049 = vmatprep.mubr.f32.mxu1 %v3107_v39  ;;  %v736_v29 = vpop.f32.mrf.mxu0 }
 0x1ea   : > { %v737_v30 = vadd.f32 %v2666_v44, %v736_v29 }
 0x1eb   : > { %v1998_v31 = vpop.f32.mrf.mxu0 }
 0x1ec   : > { %1896 = vmatmul.mubr.msk.f32.gmra.mxu1 %vm453_vm0, %v712_v20  ;;  %v752_v37 = vadd.f32 %v1998_v31, %v2666_v44 }
 0x1ed   : > { %1055 = vmatprep.mubr.f32.mxu1 %v3107_v39  ;;  %v746_v33 = vpop.f32.mrf.mxu0 }
 0x1ee   : > { %v747_v34 = vadd.f32 %v2666_v44, %v746_v33 }
 0x1ef   : > { %v2001_v35 = vpop.f32.mrf.mxu0 }
 0x1f0   : > { %1897 = vmatmul.mubr.msk.f32.gmra.mxu1 %vm453_vm0, %v717_v22  ;;  %v762_v42 = vadd.f32 %v2001_v35, %v2666_v44 }
 0x1f1   : > { %1061 = vmatprep.mubr.f32.mxu1 %v3107_v39  ;;  %v756_v38 = vpop.f32.mrf.mxu0 }
 0x1f2   : > { %v757_v40 = vadd.f32 %v2666_v44, %v756_v38 }
 0x1f3   : > { %v2004_v41 = vpop.f32.mrf.mxu0 }
 0x1f4   : > { %1898 = vmatmul.mubr.msk.f32.gmra.mxu1 %vm453_vm0, %v722_v24  ;;  %v772_v46 = vadd.f32 %v2004_v41, %v2666_v44 }
 0x1f5   : > { %1067 = vmatprep.mubr.f32.mxu1 %v3107_v39  ;;  %v766_v43 = vpop.f32.mrf.mxu0 }
 0x1f6   : > { %v767_v45 = vadd.f32 %v2666_v44, %v766_v43 }
 0x1f8   : > { %1899 = vmatmul.mubr.msk.f32.gmra.mxu1 %vm453_vm0, %v727_v26 }
 0x1f9   : > { %1073 = vmatprep.mubr.f32.mxu1 %v3107_v39 }
 0x1fc   : > { %1900 = vmatmul.mubr.msk.f32.gmra.mxu1 %vm453_vm0, %v732_v28 }
 0x1fd   : > { %1079 = vmatprep.mubr.f32.mxu1 %v3107_v39 }
 0x200   : > { %1901 = vmatmul.mubr.msk.f32.gmra.mxu1 %vm453_vm0, %v737_v30 }
 0x201   : > { %1085 = vmatprep.mubr.f32.mxu1 %v3107_v39 }
 0x204   : > { %1902 = vmatmul.mubr.msk.f32.gmra.mxu1 %vm453_vm0, %v742_v32 }
 0x205   : > { %1091 = vmatprep.mubr.f32.mxu1 %v3107_v39 }
 0x208   : > { %1903 = vmatmul.mubr.msk.f32.gmra.mxu1 %vm453_vm0, %v747_v34 }
 0x209   : > { %1097 = vmatprep.mubr.f32.mxu1 %v3107_v39 }
 0x20c   : > { %1904 = vmatmul.mubr.msk.f32.gmra.mxu1 %vm453_vm0, %v752_v37 }
 0x20d   : > { %1103 = vmatprep.mubr.f32.mxu1 %v3107_v39 }
 0x210   : > { %1905 = vmatmul.mubr.msk.f32.gmra.mxu1 %vm453_vm0, %v757_v40 }
 0x211   : > { %1109 = vmatprep.mubr.f32.mxu1 %v3107_v39 }
 0x214   : > { %1906 = vmatmul.mubr.msk.f32.gmra.mxu1 %vm453_vm0, %v762_v42 }
 0x215   : > { %1115 = vmatprep.mubr.f32.mxu1 %v3107_v39 }
 0x218   : > { %1907 = vmatmul.mubr.msk.f32.gmra.mxu1 %vm453_vm0, %v767_v45 }
 0x219   : > { %1121 = vmatprep.mubr.f32.mxu1 %v3107_v39 }
 0x21c   : > { %1908 = vmatmul.mubr.msk.f32.gmra.mxu1 %vm453_vm0, %v772_v46 }
 0x21d   : > { %1553 = vmatprep.mubr.f32.mxu1 %v2647_v36 }
 0x260   : > { %v2764_v47 = vpop.f32.mrf.mxu1 }
 0x261   : > { %3142 = vst [vmem:[#allocation20_spill] sm:$0xff] %v2764_v47 }
 0x262   : > { %v2766_v48 = vpop.f32.mrf.mxu1 }
 0x263   : > { %3143 = vst [vmem:[#allocation21_spill] sm:$0xff] %v2766_v48  ;;  %v1128_v45 = vmax.f32 %v2764_v47, %v2766_v48 }
 0x264   : > { %v2768_v49 = vpop.f32.mrf.mxu1 }
 0x265   : > { %3144 = vst [vmem:[#allocation22_spill] sm:$0xff] %v2768_v49 }
 0x266   : > { %v2770_v50 = vpop.f32.mrf.mxu1 }
 0x267   : > { %3145 = vst [vmem:[#allocation23_spill] sm:$0xff] %v2770_v50  ;;  %v1131_v41 = vmax.f32 %v2768_v49, %v2770_v50 }
 0x268   : > { %v2772_v51 = vpop.f32.mrf.mxu1 }
 0x269   : > { %3146 = vst [vmem:[#allocation24_spill] sm:$0xff] %v2772_v51 }
 0x26a   : > { %v2774_v52 = vpop.f32.mrf.mxu1 }
 0x26b   : > { %v1134_v40 = vmax.f32 %v2772_v51, %v2774_v52 }
 0x26c   : > { %v2776_v53 = vpop.f32.mrf.mxu1 }
 0x26e   : > { %v2778_v54 = vpop.f32.mrf.mxu1 }
 0x26f   : > { %v1137_v35 = vmax.f32 %v2776_v53, %v2778_v54 }
 0x270   : > { %v2780_v44 = vpop.f32.mrf.mxu1 }
 0x272   : > { %v2782_v55 = vpop.f32.mrf.mxu1 }
 0x273   : > { %v1140_v34 = vmax.f32 %v2780_v44, %v2782_v55 }
 0x274   : > { %v2784_v36 = vpop.f32.mrf.mxu1 }
 0x276   : > { %v2786_v56 = vpop.f32.mrf.mxu1 }
 0x277   : > { %v1143_v31 = vmax.f32 %v2784_v36, %v2786_v56 }
 0x278   : > { %v2788_v57 = vpop.f32.mrf.mxu1 }
 0x27a   : > { %v2790_v58 = vpop.f32.mrf.mxu1 }
 0x27b   : > { %v1146_v30 = vmax.f32 %v2788_v57, %v2790_v58 }
 0x27c   : > { %v2792_v59 = vpop.f32.mrf.mxu1 }
 0x27e   : > { %v2794_v60 = vpop.f32.mrf.mxu1 }
 0x27f   : > { %v1149_v27 = vmax.f32 %v2792_v59, %v2794_v60 }
 0x280   : > { %v2796_v61 = vpop.f32.mrf.mxu1 }
 0x282   : > { %v2798_v62 = vpop.f32.mrf.mxu1 }
 0x283   : > { %v1152_v26 = vmax.f32 %v2796_v61, %v2798_v62 }
 0x284   : > { %v2800_v63 = vpop.f32.mrf.mxu1 }
 0x286   : > { %v2802_v0 = vpop.f32.mrf.mxu1 }
 0x287   : > { %v1155_v23 = vmax.f32 %v2800_v63, %v2802_v0 }
 0x288   : > { %v2804_v1 = vpop.f32.mrf.mxu1 }
 0x28a   : > { %v2806_v2 = vpop.f32.mrf.mxu1 }
 0x28b   : > { %v1158_v22 = vmax.f32 %v2804_v1, %v2806_v2 }
 0x28c   : > { %v2808_v3 = vpop.f32.mrf.mxu1 }
 0x28e   : > { %v2810_v4 = vpop.f32.mrf.mxu1 }
 0x28f   : > { %v1161_v19 = vmax.f32 %v2808_v3, %v2810_v4 }
 0x290   : > { %v2812_v5 = vpop.f32.mrf.mxu1 }
 0x292   : > { %v2814_v6 = vpop.f32.mrf.mxu1 }
 0x293   : > { %v1164_v18 = vmax.f32 %v2812_v5, %v2814_v6 }
 0x294   : > { %v2816_v7 = vpop.f32.mrf.mxu1 }
 0x296   : > { %v2818_v8 = vpop.f32.mrf.mxu1 }
 0x297   : > { %v1167_v14 = vmax.f32 %v2816_v7, %v2818_v8 }
 0x298   : > { %v2820_v9 = vpop.f32.mrf.mxu1 }
 0x29a   : > { %v2822_v10 = vpop.f32.mrf.mxu1 }
 0x29b   : > { %v1170_v11 = vmax.f32 %v2820_v9, %v2822_v10 }
 0x29c   : > { %v2826_v12 = vpop.f32.mrf.mxu1 }
 0x29d   : > { %1171 = vmax.xlane.f32.xlu1 %v1170_v11 }
 0x29e   : > { %v2828_v13 = vpop.f32.mrf.mxu1 }
 0x29f   : > { %v1173_v15 = vmax.f32 %v2826_v12, %v2828_v13 }
 0x2a0   : > { %v2834_v16 = vpop.f32.mrf.mxu1 }
 0x2a1   : > { %3147 = vst [vmem:[#allocation25_spill] sm:$0xff] %v2834_v16  ;;  %1168 = vmax.xlane.f32.xlu1 %v1167_v14  ;;  %1174 = vmax.xlane.f32.xlu0 %v1173_v15 }
 0x2a2   : > { %v2836_v17 = vpop.f32.mrf.mxu1 }
 0x2a3   : > { %3148 = vst [vmem:[#allocation26_spill] sm:$0xff] %v2836_v17 }
 0x2a4   : > { %v2842_v20 = vpop.f32.mrf.mxu1 }
 0x2a5   : > { %3149 = vst [vmem:[#allocation27_spill] sm:$0xff] %v2842_v20  ;;  %1165 = vmax.xlane.f32.xlu1 %v1164_v18  ;;  %1162 = vmax.xlane.f32.xlu0 %v1161_v19 }
 0x2a6   : > { %v2844_v21 = vpop.f32.mrf.mxu1 }
 0x2a7   : > { %3150 = vst [vmem:[#allocation28_spill] sm:$0xff] %v2844_v21 }
 0x2a8   : > { %v2850_v24 = vpop.f32.mrf.mxu1 }
 0x2a9   : > { %3151 = vst [vmem:[#allocation29_spill] sm:$0xff] %v2850_v24  ;;  %1159 = vmax.xlane.f32.xlu1 %v1158_v22  ;;  %1156 = vmax.xlane.f32.xlu0 %v1155_v23 }
 0x2aa   : > { %v2852_v25 = vpop.f32.mrf.mxu1 }
 0x2ab   : > { %3152 = vst [vmem:[#allocation30_spill] sm:$0xff] %v2852_v25 }
 0x2ac   : > { %v2858_v28 = vpop.f32.mrf.mxu1 }
 0x2ad   : > { %3153 = vst [vmem:[#allocation31_spill] sm:$0xff] %v2858_v28  ;;  %1153 = vmax.xlane.f32.xlu1 %v1152_v26  ;;  %1150 = vmax.xlane.f32.xlu0 %v1149_v27 }
 0x2ae   : > { %v2860_v29 = vpop.f32.mrf.mxu1 }
 0x2b0   : > { %v2866_v32 = vpop.f32.mrf.mxu1 }
 0x2b1   : > { %3154 = vst [vmem:[#allocation32_spill] sm:$0xff] %v2866_v32  ;;  %1147 = vmax.xlane.f32.xlu1 %v1146_v30  ;;  %1144 = vmax.xlane.f32.xlu0 %v1143_v31 }
 0x2b2   : > { %v2868_v33 = vpop.f32.mrf.mxu1 }
 0x2b3   : > { %3155 = vst [vmem:[#allocation33_spill] sm:$0xff] %v2868_v33 }
 0x2b4   : > { %v2874_v37 = vpop.f32.mrf.mxu1 }
 0x2b5   : > { %1141 = vmax.xlane.f32.xlu1 %v1140_v34  ;;  %1138 = vmax.xlane.f32.xlu0 %v1137_v35 }
 0x2b6   : > { %v2876_v38 = vpop.f32.mrf.mxu1 }
 0x2b8   : > { %v2882_v42 = vpop.f32.mrf.mxu1 }
 0x2b9   : > { %1135 = vmax.xlane.f32.xlu1 %v1134_v40  ;;  %1132 = vmax.xlane.f32.xlu0 %v1131_v41 }
 0x2ba   : > { %v2884_v43 = vpop.f32.mrf.mxu1 }
 0x2bc   : > { %v2888_v46 = vpop.f32.mrf.mxu1 }
 0x2bd   : > { %1129 = vmax.xlane.f32.xlu1 %v1128_v45 }
 0x2be   : > { %v2890_v11 = vpop.f32.mrf.mxu1 }
 0x2c0   : > { %v2892_v14 = vpop.f32.mrf.mxu1 }
 0x2c2   : > { %v2894_v15 = vpop.f32.mrf.mxu1 }
 0x2c4   : > { %v2896_v18 = vpop.f32.mrf.mxu1 }
 0x2c6   : > { %v2898_v19 = vpop.f32.mrf.mxu1 }
 0x2c8   : > { %v2900_v22 = vpop.f32.mrf.mxu1 }
 0x2ca   : > { %v2902_v23 = vpop.f32.mrf.mxu1 }
 0x2cb   : > { %v1206_v50 = vmax.f32 %v2900_v22, %v2902_v23 }
 0x2cc   : > { %v2904_v26 = vpop.f32.mrf.mxu1 }
 0x2ce   : > { %v2906_v27 = vpop.f32.mrf.mxu1 }
 0x2d0   : > { %v2908_v30 = vpop.f32.mrf.mxu1 }
 0x2d2   : > { %v2910_v31 = vpop.f32.mrf.mxu1 }
 0x2d3   : > { %v1212_v48 = vmax.f32 %v2908_v30, %v2910_v31 }
 0x2d4   : > { %v2912_v34 = vpop.f32.mrf.mxu1 }
 0x2d6   : > { %v2914_v35 = vpop.f32.mrf.mxu1 }
 0x2d7   : > { %v1215_v51 = vmax.f32 %v2912_v34, %v2914_v35 }
 0x2d8   : > { %v2916_v40 = vpop.f32.mrf.mxu1 }
 0x2d9   : > { %3156 = vst [vmem:[#allocation34_spill] sm:$0xff] %v2916_v40 }
 0x2da   : > { %v2918_v41 = vpop.f32.mrf.mxu1 }
 0x2db   : > { %v1218_v45 = vmax.f32 %v2916_v40, %v2918_v41  ;;  %v1209_v40 = vmax.f32 %v2904_v26, %v2906_v27 }
 0x2dc   : > { %v2922_v39 = vpop.f32.mrf.mxu1 }
 0x2dd   : > { %1219 = vmax.xlane.f32.xlu1 %v1218_v45  ;;  %v1200_v45 = vmax.f32 %v2892_v14, %v2894_v15 }
 0x2de   : > { %v2924_v47 = vpop.f32.mrf.mxu1 }
 0x2df   : > { %v1221_v49 = vmax.f32 %v2922_v39, %v2924_v47 }
 0x2e1   : > { %1213 = vmax.xlane.f32.xlu1 %v1212_v48  ;;  %1222 = vmax.xlane.f32.xlu0 %v1221_v49  ;;  %v1194_v48 = vmax.f32 %v2882_v42, %v2884_v43  ;;  %v1203_v49 = vmax.f32 %v2896_v18, %v2898_v19 }
 0x2e5   : > { %1207 = vmax.xlane.f32.xlu1 %v1206_v50  ;;  %1216 = vmax.xlane.f32.xlu0 %v1215_v51  ;;  %v1188_v50 = vmax.f32 %v2866_v32, %v2868_v33  ;;  %v1197_v51 = vmax.f32 %v2888_v46, %v2890_v11 }
 0x2e9   : > { %1201 = vmax.xlane.f32.xlu1 %v1200_v45  ;;  %1210 = vmax.xlane.f32.xlu0 %v1209_v40  ;;  %v1182_v45 = vmax.f32 %v2850_v24, %v2852_v25  ;;  %v1191_v40 = vmax.f32 %v2874_v37, %v2876_v38 }
 0x2ed   : > { %1195 = vmax.xlane.f32.xlu1 %v1194_v48  ;;  %1204 = vmax.xlane.f32.xlu0 %v1203_v49  ;;  %v1176_v48 = vmax.f32 %v2834_v16, %v2836_v17  ;;  %v1185_v49 = vmax.f32 %v2858_v28, %v2860_v29 }
 0x2f1   : > { %1189 = vmax.xlane.f32.xlu1 %v1188_v50  ;;  %1198 = vmax.xlane.f32.xlu0 %v1197_v51  ;;  %v1179_v50 = vmax.f32 %v2842_v20, %v2844_v21 }
 0x2f5   : > { %1183 = vmax.xlane.f32.xlu1 %v1182_v45  ;;  %1192 = vmax.xlane.f32.xlu0 %v1191_v40 }
 0x2f9   : > { %1177 = vmax.xlane.f32.xlu1 %v1176_v48  ;;  %1186 = vmax.xlane.f32.xlu0 %v1185_v49 }
 0x2fd   : > { %1180 = vmax.xlane.f32.xlu0 %v1179_v50 }
 0x326   : > { %v1172_v51 = vpop.xlane.xlu1 %1171 }
 0x327   : > { %v1253_v45 = vsub.f32 %v2822_v10, %v1172_v51  ;;  %v1252_v17 = vsub.f32 %v2820_v9, %v1172_v51 }
 0x329   : > { %v1346_v28 = vmul.f32 1.442695, %v1253_v45  ;;  %v1344_v50 = vmul.f32 1.442695, %v1252_v17 }
 0x32a   : > { %v1175_v32 = vpop.xlane.xlu0 %1174  ;;  %v1169_v24 = vpop.xlane.xlu1 %1168 }
 0x32b   : > { %v1254_v25 = vsub.f32 %v2826_v12, %v1175_v32  ;;  %v1255_v40 = vsub.f32 %v2828_v13, %v1175_v32  ;;  %v1251_v48 = vsub.f32 %v2818_v8, %v1169_v24  ;;  %v1250_v20 = vsub.f32 %v2816_v7, %v1169_v24 }
 0x32d   : > { %v1348_v33 = vmul.f32 1.442695, %v1254_v25  ;;  %v1350_v16 = vmul.f32 1.442695, %v1255_v40  ;;  %v1342_v21 = vmul.f32 1.442695, %v1251_v48 }
 0x32e   : > { %v1166_v49 = vpop.xlane.xlu1 %1165  ;;  %v1163_v10 = vpop.xlane.xlu0 %1162  ;;  %v1340_v13 = vmul.f32 1.442695, %v1250_v20 }
 0x32f   : > { %2094 = vpow2.f32 %v1348_v33  ;;  %v1249_v12 = vsub.f32 %v2814_v6, %v1166_v49  ;;  %v1248_v25 = vsub.f32 %v2812_v5, %v1166_v49  ;;  %v1247_v32 = vsub.f32 %v2810_v4, %v1163_v10 }
 0x330   : > { %2096 = vpow2.f32 %v1350_v16  ;;  %v1246_v16 = vsub.f32 %v2808_v3, %v1163_v10  ;;  %v2413_v10 = vmov 1.0  }
 0x331   : > { %2098 = vpow2.f32 %v1346_v28  ;;  %v1338_v9 = vmul.f32 1.442695, %v1249_v12  ;;  %v1336_v33 = vmul.f32 1.442695, %v1248_v25  ;;  %v1334_v7 = vmul.f32 1.442695, %v1247_v32  ;;  %1480 = vmatprep.mubr.f32.mxu0 %v2413_v10 }
 0x332   : > { %2100 = vpow2.f32 %v1344_v50  ;;  %v1160_v8 = vpop.xlane.xlu1 %1159  ;;  %v1157_v24 = vpop.xlane.xlu0 %1156  ;;  %v1332_v20 = vmul.f32 1.442695, %v1246_v16 }
 0x333   : > { %2102 = vpow2.f32 %v1342_v21  ;;  %v1245_v17 = vsub.f32 %v2806_v2, %v1160_v8  ;;  %v1244_v5 = vsub.f32 %v2804_v1, %v1160_v8  ;;  %v1243_v4 = vsub.f32 %v2802_v0, %v1157_v24 }
 0x334   : > { %2104 = vpow2.f32 %v1340_v13  ;;  %v1242_v3 = vsub.f32 %v2800_v63, %v1157_v24 }
 0x335   : > { %2106 = vpow2.f32 %v1338_v9  ;;  %v1330_v21 = vmul.f32 1.442695, %v1245_v17  ;;  %v1328_v2 = vmul.f32 1.442695, %v1244_v5  ;;  %v1326_v48 = vmul.f32 1.442695, %v1243_v4 }
 0x336   : > { %2108 = vpow2.f32 %v1336_v33  ;;  %v1154_v45 = vpop.xlane.xlu1 %1153  ;;  %v1151_v50 = vpop.xlane.xlu0 %1150  ;;  %v1324_v0 = vmul.f32 1.442695, %v1242_v3 }
 0x337   : > { %2110 = vpow2.f32 %v1334_v7  ;;  %v1241_v1 = vsub.f32 %v2798_v62, %v1154_v45  ;;  %v1240_v12 = vsub.f32 %v2796_v61, %v1154_v45  ;;  %v1239_v25 = vsub.f32 %v2794_v60, %v1151_v50 }
 0x338   : > { %2112 = vpow2.f32 %v1332_v20  ;;  %v1238_v8 = vsub.f32 %v2792_v59, %v1151_v50 }
 0x339   : > { %2114 = vpow2.f32 %v1330_v21  ;;  %v1322_v63 = vmul.f32 1.442695, %v1241_v1  ;;  %v1320_v32 = vmul.f32 1.442695, %v1240_v12  ;;  %v1318_v61 = vmul.f32 1.442695, %v1239_v25 }
 0x33a   : > { %2116 = vpow2.f32 %v1328_v2  ;;  %v1148_v62 = vpop.xlane.xlu1 %1147  ;;  %v1145_v17 = vpop.xlane.xlu0 %1144  ;;  %v1316_v60 = vmul.f32 1.442695, %v1238_v8  ;;  %v3157_v25 = vld [vmem:[#allocation24_spill] sm:$0xff]  ;;  %v3158_v8 = vld [vmem:[#allocation23_spill] sm:$0xff] }
 0x33b   : > { %2118 = vpow2.f32 %v1326_v48  ;;  %v1237_v16 = vsub.f32 %v2790_v58, %v1148_v62  ;;  %v1236_v24 = vsub.f32 %v2788_v57, %v1148_v62  ;;  %v1235_v59 = vsub.f32 %v2786_v56, %v1145_v17 }
 0x33c   : > { %v2095_v6 = vpop.eup %2094  ;;  %2120 = vpow2.f32 %v1324_v0  ;;  %v1234_v21 = vsub.f32 %v2784_v36, %v1145_v17 }
 0x33d   : > { %v2097_v28 = vpop.eup %2096  ;;  %2122 = vpow2.f32 %v1322_v63  ;;  %v1312_v58 = vmul.f32 1.442695, %v1236_v24  ;;  %v3160_v24 = vld [vmem:[#allocation21_spill] sm:$0xff] }
 0x33e   : > { %1416 = vmatprep.subr.mxu0 %v2097_v28  ;;  %1489 = vmatprep.subr.mxu1 %v2097_v28  ;;  %v2099_v51 = vpop.eup %2098  ;;  %2124 = vpow2.f32 %v1320_v32  ;;  %v1314_v28 = vmul.f32 1.442695, %v1237_v16  ;;  %v1142_v5 = vpop.xlane.xlu1 %1141  ;;  %v1308_v56 = vmul.f32 1.442695, %v1234_v21  ;;  %v3159_v16 = vld [vmem:[#allocation22_spill] sm:$0xff] }
 0x33f   : > { %1417 = vmatpush1.xpose.msra.mxu0 %v2095_v6  ;;  %1490 = vmatpush1.xpose.msra.mxu1 %v2095_v6  ;;  %v2101_v40 = vpop.eup %2100  ;;  %2126 = vpow2.f32 %v1318_v61  ;;  %v1233_v57 = vsub.f32 %v2782_v55, %v1142_v5  ;;  %v1139_v2 = vpop.xlane.xlu0 %1138  ;;  %v1232_v3 = vsub.f32 %v2780_v44, %v1142_v5 }
 0x340   : > { %1418 = vmatprep.subr.mxu0 %v2099_v51  ;;  %1491 = vmatprep.subr.mxu1 %v2099_v51  ;;  %v2103_v49 = vpop.eup %2102  ;;  %2128 = vpow2.f32 %v1316_v60  ;;  %v1310_v51 = vmul.f32 1.442695, %v1235_v59  ;;  %v1231_v36 = vsub.f32 %v2778_v54, %v1139_v2  ;;  %v1230_v50 = vsub.f32 %v2776_v53, %v1139_v2 }
 0x341   : > { %v2105_v13 = vpop.eup %2104  ;;  %2130 = vpow2.f32 %v1314_v28  ;;  %v1306_v48 = vmul.f32 1.442695, %v1233_v57  ;;  %v1304_v55 = vmul.f32 1.442695, %v1232_v3 }
 0x342   : > { %v2107_v9 = vpop.eup %2106  ;;  %2132 = vpow2.f32 %v1312_v58  ;;  %v1302_v12 = vmul.f32 1.442695, %v1231_v36  ;;  %v1300_v54 = vmul.f32 1.442695, %v1230_v50 }
 0x343   : > { %1419 = vmatpush1.xpose.msra.mxu0 %v2101_v40  ;;  %1492 = vmatpush1.xpose.msra.mxu1 %v2101_v40  ;;  %v2109_v33 = vpop.eup %2108  ;;  %2134 = vpow2.f32 %v1310_v51  ;;  %v1133_v63 = vpop.xlane.xlu0 %1132 }
 0x344   : > { %1420 = vmatprep.subr.mxu0 %v2103_v49  ;;  %1493 = vmatprep.subr.mxu1 %v2103_v49  ;;  %v2111_v7 = vpop.eup %2110  ;;  %v1136_v49 = vpop.xlane.xlu1 %1135  ;;  %2136 = vpow2.f32 %v1308_v56  ;;  %v1227_v53 = vsub.f32 %v3158_v8, %v1133_v63 }
 0x345   : > { %v2113_v6 = vpop.eup %2112  ;;  %2138 = vpow2.f32 %v1306_v48  ;;  %v1229_v44 = vsub.f32 %v2774_v52, %v1136_v49 }
 0x346   : > { %v2115_v20 = vpop.eup %2114  ;;  %2140 = vpow2.f32 %v1304_v55  ;;  %v1294_v60 = vmul.f32 1.442695, %v1227_v53  ;;  %v3162_v55 = vld [vmem:[#allocation34_spill] sm:$0xff] }
 0x347   : > { %1421 = vmatpush1.xpose.msra.mxu0 %v2105_v13  ;;  %1494 = vmatpush1.xpose.msra.mxu1 %v2105_v13  ;;  %v2117_v4 = vpop.eup %2116  ;;  %2142 = vpow2.f32 %v1302_v12  ;;  %v1298_v32 = vmul.f32 1.442695, %v1229_v44 }
 0x348   : > { %1422 = vmatprep.subr.mxu0 %v2107_v9  ;;  %1495 = vmatprep.subr.mxu1 %v2107_v9  ;;  %v2119_v45 = vpop.eup %2118  ;;  %v1228_v9 = vsub.f32 %v3157_v25, %v1136_v49  ;;  %v1130_v61 = vpop.xlane.xlu1 %1129  ;;  %2144 = vpow2.f32 %v1300_v54 }
 0x349   : > { %v2121_v40 = vpop.eup %2120  ;;  %2146 = vpow2.f32 %v1298_v32 }
 0x34a   : > { %v2123_v1 = vpop.eup %2122  ;;  %v1296_v52 = vmul.f32 1.442695, %v1228_v9 }
 0x34b   : > { %1423 = vmatpush1.xpose.msra.mxu0 %v2109_v33  ;;  %1496 = vmatpush1.xpose.msra.mxu1 %v2109_v33  ;;  %v2125_v0 = vpop.eup %2124 }
 0x34c   : > { %1424 = vmatprep.subr.mxu0 %v2111_v7  ;;  %1497 = vmatprep.subr.mxu1 %v2111_v7  ;;  %v2127_v13 = vpop.eup %2126  ;;  %v1226_v7 = vsub.f32 %v3159_v16, %v1133_v63  ;;  %2148 = vpow2.f32 %v1296_v52 }
 0x34d   : > { %v2129_v62 = vpop.eup %2128  ;;  %2150 = vpow2.f32 %v1294_v60 }
 0x34e   : > { %v2131_v33 = vpop.eup %2130  ;;  %v1292_v59 = vmul.f32 1.442695, %v1226_v7 }
 0x34f   : > { %1425 = vmatpush1.xpose.msra.mxu0 %v2113_v6  ;;  %1498 = vmatpush1.xpose.msra.mxu1 %v2113_v6  ;;  %v2133_v17 = vpop.eup %2132  ;;  %v1225_v6 = vsub.f32 %v3160_v24, %v1130_v61 }
 0x350   : > { %1426 = vmatprep.subr.mxu0 %v2115_v20  ;;  %1499 = vmatprep.subr.mxu1 %v2115_v20  ;;  %v2135_v28 = vpop.eup %2134  ;;  %v3161_v20 = vld [vmem:[#allocation20_spill] sm:$0xff]  ;;  %2152 = vpow2.f32 %v1292_v59 }
 0x351   : > { %v1224_v5 = vsub.f32 %v3161_v20, %v1130_v61  ;;  %v2137_v58 = vpop.eup %2136  ;;  %v1290_v21 = vmul.f32 1.442695, %v1225_v6 }
 0x353   : > { %1427 = vmatpush1.xpose.msra.mxu0 %v2117_v4  ;;  %1500 = vmatpush1.xpose.msra.mxu1 %v2117_v4  ;;  %v2139_v4 = vpop.eup %2138  ;;  %2154 = vpow2.f32 %v1290_v21 }
 0x354   : > { %1428 = vmatprep.subr.mxu0 %v2119_v45  ;;  %1501 = vmatprep.subr.mxu1 %v2119_v45  ;;  %v1288_v45 = vmul.f32 1.442695, %v1224_v5  ;;  %v2141_v56 = vpop.eup %2140 }
 0x355   : > { %v2143_v48 = vpop.eup %2142 }
 0x356   : > { %2156 = vpow2.f32 %v1288_v45 }
 0x357   : > { %1429 = vmatpush1.xpose.msra.mxu0 %v2121_v40  ;;  %1502 = vmatpush1.xpose.msra.mxu1 %v2121_v40 }
 0x358   : > { %1430 = vmatprep.subr.mxu0 %v2123_v1  ;;  %1503 = vmatprep.subr.mxu1 %v2123_v1 }
 0x35b   : > { %1431 = vmatpush1.xpose.msra.mxu0 %v2125_v0  ;;  %1504 = vmatpush1.xpose.msra.mxu1 %v2125_v0  ;;  %v2145_v0 = vpop.eup %2144 }
 0x35c   : > { %1432 = vmatprep.subr.mxu0 %v2127_v13  ;;  %1505 = vmatprep.subr.mxu1 %v2127_v13  ;;  %v2147_v44 = vpop.eup %2146 }
 0x35d   : > { %v2149_v63 = vpop.eup %2148 }
 0x35e   : > { %v2151_v9 = vpop.eup %2150 }
 0x35f   : > { %1433 = vmatpush1.xpose.msra.mxu0 %v2129_v62  ;;  %1506 = vmatpush1.xpose.msra.mxu1 %v2129_v62  ;;  %v2153_v8 = vpop.eup %2152 }
 0x360   : > { %1434 = vmatprep.subr.mxu0 %v2131_v33  ;;  %1507 = vmatprep.subr.mxu1 %v2131_v33  ;;  %v2155_v33 = vpop.eup %2154 }
 0x363   : > { %1435 = vmatpush1.xpose.msra.mxu0 %v2133_v17  ;;  %1508 = vmatpush1.xpose.msra.mxu1 %v2133_v17  ;;  %v2157_v16 = vpop.eup %2156 }
 0x364   : > { %1436 = vmatprep.subr.mxu0 %v2135_v28  ;;  %1509 = vmatprep.subr.mxu1 %v2135_v28 }
 0x366   : > { %v1220_v51 = vpop.xlane.xlu1 %1219 }
 0x367   : > { %1437 = vmatpush1.xpose.msra.mxu0 %v2137_v58  ;;  %1510 = vmatpush1.xpose.msra.mxu1 %v2137_v58  ;;  %v1285_v3 = vsub.f32 %v2918_v41, %v1220_v51  ;;  %v1284_v50 = vsub.f32 %v3162_v55, %v1220_v51 }
 0x368   : > { %1438 = vmatprep.subr.mxu0 %v2139_v4  ;;  %1511 = vmatprep.subr.mxu1 %v2139_v4 }
 0x369   : > { %v1410_v12 = vmul.f32 1.442695, %v1285_v3 }
 0x36a   : > { %v1223_v57 = vpop.xlane.xlu0 %1222  ;;  %v1214_v13 = vpop.xlane.xlu1 %1213 }
 0x36b   : > { %v1286_v2 = vsub.f32 %v2922_v39, %v1223_v57  ;;  %v1287_v40 = vsub.f32 %v2924_v47, %v1223_v57  ;;  %1439 = vmatpush1.xpose.msra.mxu0 %v2141_v56  ;;  %1512 = vmatpush1.xpose.msra.mxu1 %v2141_v56  ;;  %v1408_v47 = vmul.f32 1.442695, %v1284_v50  ;;  %v1281_v54 = vsub.f32 %v2910_v31, %v1214_v13 }
 0x36c   : > { %1440 = vmatprep.subr.mxu0 %v2143_v48  ;;  %1513 = vmatprep.subr.mxu1 %v2143_v48  ;;  %v1280_v62 = vsub.f32 %v2908_v30, %v1214_v13 }
 0x36d   : > { %v1412_v36 = vmul.f32 1.442695, %v1286_v2  ;;  %v1414_v1 = vmul.f32 1.442695, %v1287_v40  ;;  %v1402_v53 = vmul.f32 1.442695, %v1281_v54 }
 0x36e   : > { %v1217_v49 = vpop.xlane.xlu0 %1216  ;;  %v1208_v61 = vpop.xlane.xlu1 %1207  ;;  %v1400_v31 = vmul.f32 1.442695, %v1280_v62 }
 0x36f   : > { %v1283_v39 = vsub.f32 %v2914_v35, %v1217_v49  ;;  %2158 = vpow2.f32 %v1412_v36  ;;  %1441 = vmatpush1.xpose.msra.mxu0 %v2145_v0  ;;  %1514 = vmatpush1.xpose.msra.mxu1 %v2145_v0  ;;  %v1282_v41 = vsub.f32 %v2912_v34, %v1217_v49  ;;  %v1277_v30 = vsub.f32 %v2902_v23, %v1208_v61 }
 0x370   : > { %2160 = vpow2.f32 %v1414_v1  ;;  %1442 = vmatprep.subr.mxu0 %v2147_v44  ;;  %1515 = vmatprep.subr.mxu1 %v2147_v44  ;;  %v1276_v24 = vsub.f32 %v2900_v22, %v1208_v61 }
 0x371   : > { %2162 = vpow2.f32 %v1410_v12  ;;  %v1406_v25 = vmul.f32 1.442695, %v1283_v39  ;;  %v1404_v32 = vmul.f32 1.442695, %v1282_v41  ;;  %v1394_v28 = vmul.f32 1.442695, %v1277_v30 }
 0x372   : > { %v1211_v35 = vpop.xlane.xlu0 %1210  ;;  %2164 = vpow2.f32 %v1408_v47  ;;  %v1202_v20 = vpop.xlane.xlu1 %1201  ;;  %v1392_v23 = vmul.f32 1.442695, %v1276_v24  ;;  %v3163_v47 = vld [vmem:[#allocation33_spill] sm:$0xff] }
 0x373   : > { %1443 = vmatpush1.xpose.msra.mxu0 %v2149_v63  ;;  %1516 = vmatpush1.xpose.msra.mxu1 %v2149_v63  ;;  %2166 = vpow2.f32 %v1406_v25  ;;  %v1279_v34 = vsub.f32 %v2906_v27, %v1211_v35  ;;  %v1278_v52 = vsub.f32 %v2904_v26, %v1211_v35  ;;  %v1273_v22 = vsub.f32 %v2894_v15, %v1202_v20 }
 0x374   : > { %1444 = vmatprep.subr.mxu0 %v2151_v9  ;;  %1517 = vmatprep.subr.mxu1 %v2151_v9  ;;  %2168 = vpow2.f32 %v1404_v32 }
 0x375   : > { %2170 = vpow2.f32 %v1402_v53  ;;  %v1398_v7 = vmul.f32 1.442695, %v1279_v34  ;;  %v1396_v6 = vmul.f32 1.442695, %v1278_v52  ;;  %v1386_v2 = vmul.f32 1.442695, %v1273_v22 }
 0x376   : > { %v1205_v17 = vpop.xlane.xlu0 %1204  ;;  %2172 = vpow2.f32 %v1400_v31  ;;  %v1196_v3 = vpop.xlane.xlu1 %1195  ;;  %v3165_v34 = vld [vmem:[#allocation31_spill] sm:$0xff]  ;;  %v3166_v31 = vld [vmem:[#allocation30_spill] sm:$0xff] }
 0x377   : > { %1445 = vmatpush1.xpose.msra.mxu0 %v2153_v8  ;;  %1518 = vmatpush1.xpose.msra.mxu1 %v2153_v8  ;;  %2174 = vpow2.f32 %v1398_v7  ;;  %v1275_v59 = vsub.f32 %v2898_v19, %v1205_v17  ;;  %v1274_v5 = vsub.f32 %v2896_v18, %v1205_v17  ;;  %v1272_v19 = vsub.f32 %v2892_v14, %v1202_v20  ;;  %v3170_v22 = vld [vmem:[#allocation26_spill] sm:$0xff] }
 0x378   : > { %1446 = vmatprep.subr.mxu0 %v2155_v33  ;;  %1519 = vmatprep.subr.mxu1 %v2155_v33  ;;  %2176 = vpow2.f32 %v1396_v6  ;;  %v1269_v14 = vsub.f32 %v2884_v43, %v1196_v3  ;;  %v3168_v6 = vld [vmem:[#allocation28_spill] sm:$0xff] }
 0x379   : > { %2178 = vpow2.f32 %v1394_v28  ;;  %v1390_v21 = vmul.f32 1.442695, %v1275_v59  ;;  %v1388_v57 = vmul.f32 1.442695, %v1274_v5  ;;  %v1384_v15 = vmul.f32 1.442695, %v1272_v19 }
 0x37a   : > { %v1199_v51 = vpop.xlane.xlu0 %1198  ;;  %2180 = vpow2.f32 %v1392_v23  ;;  %v1378_v0 = vmul.f32 1.442695, %v1269_v14  ;;  %v1190_v39 = vpop.xlane.xlu1 %1189  ;;  %v3169_v23 = vld [vmem:[#allocation27_spill] sm:$0xff]  ;;  %v3171_v19 = vld [vmem:[#allocation25_spill] sm:$0xff] }
 0x37b   : > { %1447 = vmatpush1.xpose.msra.mxu0 %v2157_v16  ;;  %1520 = vmatpush1.xpose.msra.mxu1 %v2157_v16  ;;  %2182 = vpow2.f32 %v1390_v21  ;;  %v1271_v18 = vsub.f32 %v2890_v11, %v1199_v51  ;;  %v1270_v40 = vsub.f32 %v2888_v46, %v1199_v51  ;;  %v1268_v11 = vsub.f32 %v2882_v42, %v1196_v3 }
 0x37c   : > { %v2159_v60 = vpop.eup %2158  ;;  %2184 = vpow2.f32 %v1388_v57  ;;  %v1265_v42 = vsub.f32 %v3163_v47, %v1190_v39 }
 0x37d   : > { %v2161_v27 = vpop.eup %2160  ;;  %2186 = vpow2.f32 %v1386_v2  ;;  %v1382_v36 = vmul.f32 1.442695, %v1271_v18  ;;  %v1380_v55 = vmul.f32 1.442695, %v1270_v40  ;;  %v1376_v43 = vmul.f32 1.442695, %v1268_v11 }
 0x37e   : > { %1448 = vmatprep.subr.mxu0 %v2161_v27  ;;  %1521 = vmatprep.subr.mxu1 %v2161_v27  ;;  %v2163_v26 = vpop.eup %2162  ;;  %v1193_v49 = vpop.xlane.xlu0 %1192  ;;  %2188 = vpow2.f32 %v1384_v15  ;;  %v1370_v62 = vmul.f32 1.442695, %v1265_v42 }
 0x37f   : > { %1449 = vmatpush2.xpose.msra.mxu0 %v2159_v60  ;;  %1522 = vmatpush2.xpose.msra.mxu1 %v2159_v60  ;;  %v2165_v58 = vpop.eup %2164  ;;  %2190 = vpow2.f32 %v1382_v36  ;;  %v1267_v46 = vsub.f32 %v2876_v38, %v1193_v49  ;;  %v1266_v44 = vsub.f32 %v2874_v37, %v1193_v49  ;;  %v3164_v38 = vld [vmem:[#allocation32_spill] sm:$0xff]  ;;  %v1184_v8 = vpop.xlane.xlu1 %1183 }
 0x380   : > { %1450 = vmatprep.subr.mxu0 %v2163_v26  ;;  %1523 = vmatprep.subr.mxu1 %v2163_v26  ;;  %v2167_v4 = vpop.eup %2166  ;;  %2192 = vpow2.f32 %v1380_v55  ;;  %v1264_v25 = vsub.f32 %v3164_v38, %v1190_v39  ;;  %v1261_v52 = vsub.f32 %v3166_v31, %v1184_v8  ;;  %v1664_v39 = vld [vmem:[%s3099_s5] sm:$0xff]  ;;  %v1680_v31 = vstv %s1651_s9 }
 0x381   : > { %v2169_v45 = vpop.eup %2168  ;;  %2194 = vpow2.f32 %v1378_v0  ;;  %v1374_v41 = vmul.f32 1.442695, %v1267_v46  ;;  %v1372_v9 = vmul.f32 1.442695, %v1266_v44  ;;  %v2227_v0 = vld [vmem:[%s2595_s26 + $0x18] sm:$0xff]  ;;  %v3172_v46 = vmov 0.0  }
 0x382   : > { %v2171_v56 = vpop.eup %2170  ;;  %v1187_v54 = vpop.xlane.xlu0 %1186  ;;  %2196 = vpow2.f32 %v1376_v43  ;;  %v1368_v53 = vmul.f32 1.442695, %v1264_v25  ;;  %v1362_v24 = vmul.f32 1.442695, %v1261_v52  ;;  %v1665_v43 = vld [vmem:[%s3099_s5 + $0x8] sm:$0xff]  ;;  %v2414_v44 = vmov 0  }
 0x383   : > { %1451 = vmatpush2.xpose.msra.mxu0 %v2165_v58  ;;  %1524 = vmatpush2.xpose.msra.mxu1 %v2165_v58  ;;  %v2173_v48 = vpop.eup %2172  ;;  %2198 = vpow2.f32 %v1374_v41  ;;  %v1263_v37 = vsub.f32 %v2860_v29, %v1187_v54  ;;  %v1262_v33 = vsub.f32 %v3165_v34, %v1187_v54  ;;  %v3167_v29 = vld [vmem:[#allocation29_spill] sm:$0xff]  ;;  %v1178_v26 = vpop.xlane.xlu1 %1177  ;;  %v1566_v41 = vld [vmem:[#allocation8] sm:$0xff]  ;;  %v1652_v25 = vlaneseq }
 0x384   : > { %1452 = vmatprep.subr.mxu0 %v2167_v4  ;;  %1525 = vmatprep.subr.mxu1 %v2167_v4  ;;  %v2175_v1 = vpop.eup %2174  ;;  %2200 = vpow2.f32 %v1372_v9  ;;  %v1260_v17 = vsub.f32 %v3167_v29, %v1184_v8  ;;  %v1257_v21 = vsub.f32 %v3170_v22, %v1178_v26  ;;  %v1256_v57 = vsub.f32 %v3171_v19, %v1178_v26 }
 0x385   : > { %v2177_v50 = vpop.eup %2176  ;;  %2202 = vpow2.f32 %v1370_v62  ;;  %v1366_v16 = vmul.f32 1.442695, %v1263_v37  ;;  %v1364_v60 = vmul.f32 1.442695, %v1262_v33  ;;  %2092 = vset.pattern.permute.xlu0 %v2414_v44  ;;  %2093 = vset.pattern.permute.xlu1 %v2414_v44  ;;  %v1653_v9 = vshrl.u32 %v1652_v25, 7 }
 0x386   : > { %v2179_v12 = vpop.eup %2178  ;;  %v1181_v7 = vpop.xlane.xlu0 %1180  ;;  %2204 = vpow2.f32 %v1368_v53  ;;  %v1360_v20 = vmul.f32 1.442695, %v1260_v17  ;;  %v1354_v18 = vmul.f32 1.442695, %v1257_v21  ;;  %v1352_v3 = vmul.f32 1.442695, %v1256_v57  ;;  %1668 = vperm.xlu0 %2092, %v1664_v39   ;;  %1673 = vperm.xlu1 %2093, %v1665_v43  }
 0x387   : > { %1453 = vmatpush2.xpose.msra.mxu0 %v2169_v45  ;;  %1526 = vmatpush2.xpose.msra.mxu1 %v2169_v45  ;;  %v2181_v13 = vpop.eup %2180  ;;  %2206 = vpow2.f32 %v1366_v16  ;;  %v1259_v28 = vsub.f32 %v3168_v6, %v1181_v7  ;;  %v1258_v5 = vsub.f32 %v3169_v23, %v1181_v7  ;;  %v2229_v6 = vld [vmem:[%s2603_s12] sm:$0xff]  ;;  %v2231_v21 = vld [vmem:[%s2603_s12 + $0x10] sm:$0xff] }
 0x388   : > { %1454 = vmatprep.subr.mxu0 %v2171_v56  ;;  %1527 = vmatprep.subr.mxu1 %v2171_v56  ;;  %v2183_v63 = vpop.eup %2182  ;;  %2208 = vpow2.f32 %v1364_v60 }
 0x389   : > { %v2185_v35 = vpop.eup %2184  ;;  %2210 = vpow2.f32 %v1362_v24  ;;  %v1358_v4 = vmul.f32 1.442695, %v1259_v28  ;;  %v1356_v45 = vmul.f32 1.442695, %v1258_v5 }
 0x38a   : > { %v2187_v32 = vpop.eup %2186  ;;  %2212 = vpow2.f32 %v1360_v20  ;;  %v2230_v20 = vld [vmem:[%s2603_s12 + $0x8] sm:$0xff] }
 0x38b   : > { %1455 = vmatpush2.xpose.msra.mxu0 %v2173_v48  ;;  %1528 = vmatpush2.xpose.msra.mxu1 %v2173_v48  ;;  %v2189_v61 = vpop.eup %2188  ;;  %2214 = vpow2.f32 %v1358_v4 }
 0x38c   : > { %1456 = vmatprep.subr.mxu0 %v2175_v1  ;;  %1529 = vmatprep.subr.mxu1 %v2175_v1  ;;  %v2191_v30 = vpop.eup %2190  ;;  %2216 = vpow2.f32 %v1356_v45 }
 0x38d   : > { %v2193_v27 = vpop.eup %2192  ;;  %2218 = vpow2.f32 %v1354_v18 }
 0x38e   : > { %v2195_v59 = vpop.eup %2194  ;;  %2220 = vpow2.f32 %v1352_v3 }
 0x38f   : > { %1457 = vmatpush2.xpose.msra.mxu0 %v2177_v50  ;;  %1530 = vmatpush2.xpose.msra.mxu1 %v2177_v50  ;;  %v2197_v58 = vpop.eup %2196  ;;  %v2226_v50 = vld [vmem:[%s2595_s26] sm:$0xff] }
 0x390   : > { %1458 = vmatprep.subr.mxu0 %v2179_v12  ;;  %1531 = vmatprep.subr.mxu1 %v2179_v12  ;;  %v2199_v51 = vpop.eup %2198  ;;  %v2228_v12 = vld [vmem:[%s2595_s26 + $0x10] sm:$0xff]  ;;  %s1694_s26 = scalar_lea.sflag [#allocation5], %s2588_s0 }
 0x391   : > { %v2201_v2 = vpop.eup %2200 }
 0x392   : > { %v2203_v56 = vpop.eup %2202 }
 0x393   : > { %1459 = vmatpush2.xpose.msra.mxu0 %v2181_v13  ;;  %1532 = vmatpush2.xpose.msra.mxu1 %v2181_v13  ;;  %v2205_v15 = vpop.eup %2204 }
 0x394   : > { %1460 = vmatprep.subr.mxu0 %v2183_v63  ;;  %1533 = vmatprep.subr.mxu1 %v2183_v63  ;;  %v2207_v40 = vpop.eup %2206  ;;  %v1567_v63 = vld [vmem:[#allocation8 + $0x8] sm:$0xff] }
 0x395   : > { %v2209_v48 = vpop.eup %2208 }
 0x396   : > { %v2211_v14 = vpop.eup %2210 }
 0x397   : > { %1461 = vmatpush2.xpose.msra.mxu0 %v2185_v35  ;;  %1534 = vmatpush2.xpose.msra.mxu1 %v2185_v35  ;;  %v2213_v36 = vpop.eup %2212  ;;  %v1654_v35 = vsub.s32 0, %v1653_v9 }
 0x398   : > { %1462 = vmatprep.subr.mxu0 %v2187_v32  ;;  %1535 = vmatprep.subr.mxu1 %v2187_v32  ;;  %v2215_v1 = vpop.eup %2214 }
 0x399   : > { %v2217_v49 = vpop.eup %2216 }
 0x39a   : > { %v2219_v11 = vpop.eup %2218 }
 0x39b   : > { %1463 = vmatpush2.xpose.msra.mxu0 %v2189_v61  ;;  %1536 = vmatpush2.xpose.msra.mxu1 %v2189_v61  ;;  %v2221_v55 = vpop.eup %2220 }
 0x39c   : > { %1464 = vmatprep.subr.mxu0 %v2191_v30  ;;  %1537 = vmatprep.subr.mxu1 %v2191_v30 }
 0x39f   : > { %1465 = vmatpush2.xpose.msra.mxu0 %v2193_v27  ;;  %1538 = vmatpush2.xpose.msra.mxu1 %v2193_v27 }
 0x3a0   : > { %1466 = vmatprep.subr.mxu0 %v2195_v59  ;;  %1539 = vmatprep.subr.mxu1 %v2195_v59 }
 0x3a3   : > { %1467 = vmatpush2.xpose.msra.mxu0 %v2197_v58  ;;  %1540 = vmatpush2.xpose.msra.mxu1 %v2197_v58 }
 0x3a4   : > { %1468 = vmatprep.subr.mxu0 %v2199_v51  ;;  %1541 = vmatprep.subr.mxu1 %v2199_v51  ;;  %v2232_v51 = vld [vmem:[%s2603_s12 + $0x18] sm:$0xff] }
 0x3a7   : > { %1469 = vmatpush2.xpose.msra.mxu0 %v2201_v2  ;;  %1542 = vmatpush2.xpose.msra.mxu1 %v2201_v2 }
 0x3a8   : > { %1470 = vmatprep.subr.mxu0 %v2203_v56  ;;  %1543 = vmatprep.subr.mxu1 %v2203_v56 }
 0x3ab   : > { %1471 = vmatpush2.xpose.msra.mxu0 %v2205_v15  ;;  %1544 = vmatpush2.xpose.msra.mxu1 %v2205_v15 }
 0x3ac   : > { %1472 = vmatprep.subr.mxu0 %v2207_v40  ;;  %1545 = vmatprep.subr.mxu1 %v2207_v40 }
 0x3af   : > { %1473 = vmatpush2.xpose.msra.mxu0 %v2209_v48  ;;  %1546 = vmatpush2.xpose.msra.mxu1 %v2209_v48 }
 0x3b0   : > { %1474 = vmatprep.subr.mxu0 %v2211_v14  ;;  %1547 = vmatprep.subr.mxu1 %v2211_v14 }
 0x3b3   : > { %1475 = vmatpush2.xpose.msra.mxu0 %v2213_v36  ;;  %1548 = vmatpush2.xpose.msra.mxu1 %v2213_v36 }
 0x3b4   : > { %1476 = vmatprep.subr.mxu0 %v2215_v1  ;;  %1549 = vmatprep.subr.mxu1 %v2215_v1 }
 0x3b7   : > { %1477 = vmatpush2.xpose.msra.mxu0 %v2217_v49  ;;  %1550 = vmatpush2.xpose.msra.mxu1 %v2217_v49 }
 0x3b8   : > { %1478 = vmatprep.subr.mxu0 %v2219_v11  ;;  %1551 = vmatprep.subr.mxu1 %v2219_v11 }
 0x3bb   : > { %1479 = vmatpush2.xpose.msra.mxu0 %v2221_v55  ;;  %1552 = vmatpush2.xpose.msra.mxu1 %v2221_v55 }
 0x3be   : > { %1554 = vmatmul.mubr.f32.vlgmr.msra.gmra.mxu1 %v2226_v50  ;;  %1481 = vmatmul.mubr.f32.vlgmr.msra.gmra.mxu0 %v2413_v10 }
 0x3bf   : > { %1559 = vmatprep.mubr.f32.mxu1 %v2227_v0  ;;  %1638 = vmatprep.mubr.f32.mxu0 %v3172_v46 }
 0x3c2   : > { %1560 = vmatmul.mubr.f32.gmra.mxu1 %v2228_v12 }
 0x401   : > { %v1669_v34 = vpop.permute.xlu0 %1668  ;;  %v1674_v7 = vpop.permute.xlu1 %1673 }
 0x47e   : > { %v1555_v10 = vpop.f32.mrf.mxu1  ;;  %v1482_v54 = vpop.f32.mrf.mxu0 }
 0x47f   : > { %2222 = vrcp.f32 %v1482_v54 }
 0x480   : > { %v1557_v13 = vpop.f32.mrf.mxu1  ;;  %v1484_v38 = vpop.f32.mrf.mxu0 }
 0x481   : > { %2224 = vrcp.f32 %v1484_v38 }
 0x482   : > { %v1561_v47 = vpop.f32.mrf.mxu1 }
 0x484   : > { %v1563_v42 = vpop.f32.mrf.mxu1 }
 0x485   : > { %1602 = vmatprep.subr.mxu0 %v1563_v42 }
 0x486   : > { %1603 = vmatpush1.msra.mxu0 %v1561_v47 }
 0x487   : > { %1604 = vmatprep.subr.mxu0 %v1557_v13 }
 0x488   : > { %1605 = vmatpush1.msra.mxu0 %v1555_v10 }
 0x489   : > { %1909 = vmatmul.mubr.msk.f32.vlgmr.msra.gmra.mxu0 %vm453_vm0, %v1566_v41 }
 0x48a   : > { %1644 = vmatprep.mubr.f32.mxu0 %v3172_v46 }
 0x48c   : > { %v2223_v62 = vpop.eup %2222 }
 0x48d   : > { %1910 = vmatmul.mubr.msk.f32.gmra.mxu0 %vm453_vm0, %v1567_v63  ;;  %v1655_v32 = vrot.slane %v2223_v62, %v1654_v35 }
 0x48e   : > { %v2225_v37 = vpop.eup %2224 }
 0x48f   : > { %v1659_v8 = vrot.slane %v2225_v37, %v1654_v35 }
 0x549   : > { %v1640_v53 = vpop.f32.mrf.mxu0 }
 0x54a   : > { %v1660_v33 = vmul.f32 %v1655_v32, %v1640_v53 }
 0x54b   : > { %v1642_v61 = vpop.f32.mrf.mxu0 }
 0x54c   : > { %v1661_v52 = vmul.f32 %v1659_v8, %v1642_v61  ;;  %v1676_v16 = vadd.f32 %v1669_v34, %v1660_v33 }
 0x54d   : > { %v1646_v30 = vpop.f32.mrf.mxu0 }
 0x54e   : > { %v1677_v29 = vadd.f32 %v1669_v34, %v1661_v52  ;;  %v1681_v17 = vmul.f32 %v1680_v31, %v1676_v16  ;;  %v1662_v60 = vmul.f32 %v1655_v32, %v1646_v30 }
 0x54f   : > { %v1648_v27 = vpop.f32.mrf.mxu0 }
 0x550   : > { %v1682_v24 = vmul.f32 %v1680_v31, %v1677_v29  ;;  %v1685_v28 = vadd.f32 %v2229_v6, %v1681_v17  ;;  %v1663_v59 = vmul.f32 %v1659_v8, %v1648_v27  ;;  %v1678_v26 = vadd.f32 %v1674_v7, %v1662_v60 }
 0x552   : > { %v1686_v23 = vadd.f32 %v2230_v20, %v1682_v24  ;;  %1689 = vst [vmem:[%s369_s17] sm:$0xff] %v1685_v28  ;;  %v1679_v5 = vadd.f32 %v1674_v7, %v1663_v59  ;;  %v1683_v58 = vmul.f32 %v1680_v31, %v1678_v26 }
 0x554   : > { %1690 = vst [vmem:[%s369_s17 + $0x8] sm:$0xff] %v1686_v23  ;;  %v1684_v22 = vmul.f32 %v1680_v31, %v1679_v5  ;;  %v1687_v4 = vadd.f32 %v2231_v21, %v1683_v58 }
 0x556   : > { %v1688_v19 = vadd.f32 %v2232_v51, %v1684_v22  ;;  %1691 = vst [vmem:[%s369_s17 + $0x10] sm:$0xff] %v1687_v4 }
 0x558   : > { %1692 = vst [vmem:[%s369_s17 + $0x18] sm:$0xff] %v1688_v19 }
 0x559   : > { %2328 = shalt.err (!%p2325_p6)
}
 0x55a   : > { %s2329_s12 = scalar_lea.hbm %s3045_s11, 512  ;;  %s2333_s14 = scalar_lea.hbm %s3101_s7, 1024 }
 0x55b   : > { %p2330_p9 = scmp.ne.s32.totalorder %s3045_s11, %s2329_s12  ;;  %p2334_p3 = scmp.lt.s32.totalorder %s3045_s11, %s3101_s7 }
 0x55c   : > { %p2335_p11 = scmp.lt.s32.totalorder %s2333_s14, %s2329_s12 }
 0x55d   : > { %p2331_p13 = pnand %p2330_p9, %p2544_p0 }
 0x55e   : > { %p2336_p1 = por %p2335_p11, %p2334_p3 }
 0x55f   : > { %p2332_p12 = pneg %p2331_p13 }
 0x561   : > { %p2337_p4 = pnand %p2336_p1, %p2332_p12 }
 0x563   : > { %2340 = shalt.err (!%p2337_p4)
}
 0x564   : > { %s2416_s19 = smov 256   ;;  %s2417_s21 = smov 16  }
 0x565   : > { %2013 = dma.vmem_to_hbm [thread:$0]  (%p2544_p0), %s3039_s18, 512, %s3045_s11, %s1694_s26, %s2416_s19, %s2416_s19, %s2417_s21  }
 0x566 PF: > { %s3173_s25 = sld [smem:[#allocation14_spill]] }
 0x567   : > { %s3174_s23 = sld [smem:[#allocation17_spill]] }
 0x56c   : > { %s1724_s9 = sand.u32 1, %s3173_s25  }
 0x56d   : > { %p3175_p8 = scmp.ne.s32.totalorder %s3174_s23, 0  ;;  %s1725_s17 = scalar_lea.sflag [#allocation5], %s1724_s9 }
 0x56f   : > { %p2027_p5 = pnand %p1832_p10, %p3175_p8 }
 0x571   : > { %p2028_p7 = pneg %p2027_p5 }
 0x573   : > { %2378 = dma.done.wait (%p2028_p7), %s1725_s17, 512  }
 0x574   : > { %2380 = vsyncadd (%p2028_p7), %s1725_s17, 4294966784  ;;  %s27_s8 = sadd.s32 1, %s2403_s8   ;;  %s3176_s22 = sld [smem:[#allocation15_spill]] }
 0x575   : > { %p24_p2 = scmp.ge.s32.totalorder %s27_s8, 4   ;;  %s3177_s28 = sld [smem:[#allocation19_spill]] }
 0x576   : > { %s3178_s29 = sld [smem:[#allocation16_spill]]  ;;  %s3180_s26 = smov %s2387_s27 }
 0x577   : > { %s3179_s30 = sld [smem:[#allocation18_spill]]  ;;  %26 = sbr.rel (!%p24_p2) target bundleno = 12 (0xc), region = 110 }
 0x57a   : > { %s3181_s27 = smov %s3176_s22 }
 0x57c   :  { %1730 = vsyncpa [#allocation4], 1 }
 0x57d   :  { %1732 = vsyncpa [#allocation4 + $0x1], 1 }
 0x57e   :  { %1733 = vsyncpa [#allocation7], 1 }
 0x57f   :  { %1735 = vsyncpa [#allocation7 + $0x1], 1 }
 0x580   :  { %1736 = vsyncpa [#allocation5], 1 }
 0x581   :  { %1738 = vsyncpa [#allocation5 + $0x1], 1 }

</bundles_post_ra>
